<compile_context>
chip_gen: v5e
topology: v5e:2x2
jax: 0.10.0
libtpu: 0.0.40
codegen_flags: <defaults>
</compile_context>

<pallas_src>
import jax
import jax.numpy as jnp
from jax.experimental import pallas as pl
from jax.experimental.pallas import tpu as pltpu

FILTER_SIZES = (2, 3, 4, 5)
BN_EPS = 1e-5


def classifier_kernel(x_ref, wconv_ref, bconv_ref, mask_ref,
                      fc1_w_ref, fc1_b_ref, fc2_w_ref, fc2_b_ref, out_ref):
    TB, L_in, Cp = x_ref.shape
    Lr, F4 = mask_ref.shape                 # F4 = filter_num * len(FILTER_SIZES)
    K = wconv_ref.shape[0]                  # n_taps * Cp
    n_taps = K // Cp

    # ---- im2col conv stage: n_taps shifted bf16 views -> one K=n_taps*Cp matmul ----
    xw = x_ref[...]                                              # (TB, L_in, Cp) bf16
    taps = [xw[:, k:k + Lr, :] for k in range(n_taps)]           # small bf16 sublane shifts
    xi = jnp.concatenate(taps, axis=-1)                          # (TB, Lr, n_taps*Cp)
    z = jnp.dot(xi.reshape(TB * Lr, K), wconv_ref[...],
                preferred_element_type=jnp.float32)              # (TB*Lr, F4) f32
    conv = jnp.maximum(z.reshape(TB, Lr, F4) + bconv_ref[...], 0.0)

    # Full-length max pool. ReLU guarantees conv >= 0, so zeroing the invalid
    # positions (t > L - fs, and the Lr padding rows) can never beat the valid
    # max. If the activation ever changes, switch to jnp.where(mask, conv, -inf).
    pooled = jnp.max(conv * mask_ref[...], axis=1)               # (TB, F4)

    # ---- fc1 + ReLU (pooled already ordered [fs2|fs3|fs4|fs5]) ----
    h = jnp.dot(pooled.astype(jnp.bfloat16), fc1_w_ref[...],
                preferred_element_type=jnp.float32) + fc1_b_ref[...]
    h = jnp.maximum(h, 0.0)

    # BatchNorm1d (eval, running stats) is folded into fc2 in the wrapper;
    # Dropout(p=0.5) is identity at inference.
    # TODO(synk): training-mode dropout / batch statistics not implemented (stochastic).
    out = jnp.dot(h.astype(jnp.bfloat16), fc2_w_ref[...],
                  preferred_element_type=jnp.float32) + fc2_b_ref[...]
    out_ref[...] = out.astype(out_ref.dtype)


def character_cnn_forward(x_ncw, params, num_classes):
    """x_ncw: (B, embed_size, L), the PyTorch Conv1d (NCW) input layout."""
    B, C, L = x_ncw.shape
    filter_num = params["conv2_b"].shape[0]
    F4 = filter_num * len(FILTER_SIZES)
    n_taps = max(FILTER_SIZES)
    H = params["fc1_b"].shape[0]

    C_pad = -(-C // 128) * 128                       # lane-pad channels
    L_rows = -(-L // 16) * 16                        # im2col M rows (bf16 sublane tile)
    L_in_pad = -(-(L_rows + n_taps - 1) // 16) * 16  # input rows so shifted slices stay in-bounds

    # Batch tile: aim for >= 2 grid steps (both v7x TensorCores busy, >=2
    # pipeline steps) while keeping the tile large enough to fill the MXU M dim.
    TB = max(8, min(128, (-(-B // 2) + 7) // 8 * 8))
    nb = pl.cdiv(B, TB)
    B_pad = nb * TB                                  # pad batch: no OOB reads on the last tile

    # TODO(synk): have the producer emit (B, L, C) bf16 directly; this
    # transpose+pad is an extra HBM pass outside the kernel.
    x_blc = jnp.transpose(x_ncw.astype(jnp.bfloat16), (0, 2, 1))
    x_pad = jnp.pad(x_blc, ((0, B_pad - B), (0, L_in_pad - L), (0, C_pad - C)))

    # im2col weight: row block [k*C_pad, (k+1)*C_pad) is tap k; columns ordered
    # [fs2|fs3|fs4|fs5] x filter_num (same as the PyTorch concat). Taps k >= fs
    # are zero rows (dead K only — no wasted output lanes or f32 stores).
    tap_blocks = []
    for k in range(n_taps):
        cols = []
        for fs in FILTER_SIZES:
            if k < fs:
                wk = params[f"conv{fs}_w"][:, :, k].T            # (C, Fn)
            else:
                wk = jnp.zeros((C, filter_num), jnp.float32)
            if C_pad > C:
                wk = jnp.pad(wk, ((0, C_pad - C), (0, 0)))
            cols.append(wk)
        tap_blocks.append(jnp.concatenate(cols, axis=1))         # (C_pad, F4)
    w_conv = jnp.concatenate(tap_blocks, axis=0).astype(jnp.bfloat16)  # (n_taps*C_pad, F4)

    b_conv = jnp.concatenate(
        [params[f"conv{fs}_b"] for fs in FILTER_SIZES]).reshape(1, F4)

    # Valid-position mask: position t valid iff t <= L - fs (padding rows t >= L
    # are automatically invalid). Note: if L < fs a column is all-zero and the
    # pool silently returns 0 (PyTorch would error on such inputs).
    fs_per_col = jnp.repeat(jnp.array(FILTER_SIZES, jnp.int32), filter_num)
    mask = (jnp.arange(L_rows)[:, None] <= (L - fs_per_col)[None, :]).astype(jnp.float32)

    # fc1, padded to 128 output lanes (padding columns are exact zeros).
    H_PAD = max(128, -(-H // 128) * 128)
    fc1_w = jnp.zeros((F4, H_PAD), jnp.float32).at[:, :H].set(params["fc1_w"].T)
    fc1_b = jnp.zeros((1, H_PAD), jnp.float32).at[0, :H].set(params["fc1_b"])

    # Fold eval-mode BatchNorm1d into fc2; pad output lanes to a full 128-lane tile.
    s = params["bn_gamma"] * jax.lax.rsqrt(params["bn_var"] + BN_EPS)
    t = params["bn_beta"] - params["bn_mean"] * s
    w2 = (params["fc2_w"] * s[None, :]).T                        # (H, num_classes)
    b2 = params["fc2_w"] @ t + params["fc2_b"]                   # (num_classes,)
    NC_PAD = max(128, -(-num_classes // 128) * 128)
    fc2_w = jnp.zeros((H_PAD, NC_PAD), jnp.float32).at[:H, :num_classes].set(w2)
    fc2_b = jnp.zeros((1, NC_PAD), jnp.float32).at[0, :num_classes].set(b2)

    fc1_w = fc1_w.astype(jnp.bfloat16)
    fc2_w = fc2_w.astype(jnp.bfloat16)

    # Grid-invariant operands: constant index map -> single buffer (no point
    # double-buffering; saves ~0.45 MB VMEM, matters most on v5e).
    def const_spec(a):
        return pl.BlockSpec(a.shape, lambda b, _nd=a.ndim: (0,) * _nd,
                            pipeline_mode=pl.Buffered(1))

    Kdim = n_taps * C_pad
    cost = pl.CostEstimate(
        flops=2 * B_pad * (L_rows * Kdim * F4 + F4 * H_PAD + H_PAD * NC_PAD),
        transcendentals=0,
        bytes_accessed=(x_pad.size * 2
                        + (w_conv.size + fc1_w.size + fc2_w.size) * 2
                        + (b_conv.size + mask.size + fc1_b.size + fc2_b.size) * 4
                        + B_pad * NC_PAD * 4),
    )

    out_full = pl.pallas_call(
        classifier_kernel,
        out_shape=jax.ShapeDtypeStruct((B_pad, NC_PAD), jnp.float32),
        grid=(nb,),
        in_specs=[
            pl.BlockSpec((TB, L_in_pad, C_pad), lambda b: (b, 0, 0)),
            const_spec(w_conv), const_spec(b_conv), const_spec(mask),
            const_spec(fc1_w), const_spec(fc1_b),
            const_spec(fc2_w), const_spec(fc2_b),
        ],
        out_specs=pl.BlockSpec((TB, NC_PAD), lambda b: (b, 0)),
        compiler_params=pltpu.CompilerParams(
            dimension_semantics=("parallel",)),
        cost_estimate=cost,
    )(x_pad, w_conv, b_conv, mask, fc1_w, fc1_b, fc2_w, fc2_b)
    return out_full[:B, :num_classes]


def reference_forward(x_ncw, params, num_classes):
    """Plain-JAX f32 reference matching the PyTorch eval-mode forward."""
    outs = []
    for fs in FILTER_SIZES:
        w, b = params[f"conv{fs}_w"], params[f"conv{fs}_b"]
        y = jax.lax.conv_general_dilated(
            x_ncw, w, window_strides=(1,), padding="VALID",
            dimension_numbers=("NCH", "OIH", "NCH"))
        y = jnp.maximum(y + b[None, :, None], 0.0)
        outs.append(jnp.max(y, axis=2))
    h = jnp.concatenate(outs, axis=1)
    h = jnp.maximum(h @ params["fc1_w"].T + params["fc1_b"], 0.0)
    h = ((h - params["bn_mean"]) / jnp.sqrt(params["bn_var"] + BN_EPS)
         * params["bn_gamma"] + params["bn_beta"])
    return h @ params["fc2_w"].T + params["fc2_b"]


def init_params(key, embed_size, filter_num, num_classes):
    params = {}
    keys = jax.random.split(key, 16)
    ki = iter(keys)
    for fs in FILTER_SIZES:
        params[f"conv{fs}_w"] = 0.05 * jax.random.normal(
            next(ki), (filter_num, embed_size, fs), jnp.float32)
        params[f"conv{fs}_b"] = 0.01 * jax.random.normal(
            next(ki), (filter_num,), jnp.float32)
    fc1_in = filter_num * len(FILTER_SIZES)
    params["fc1_w"] = 0.05 * jax.random.normal(next(ki), (64, fc1_in), jnp.float32)
    params["fc1_b"] = 0.01 * jax.random.normal(next(ki), (64,), jnp.float32)
    params["bn_gamma"] = 1.0 + 0.1 * jax.random.normal(next(ki), (64,), jnp.float32)
    params["bn_beta"] = 0.1 * jax.random.normal(next(ki), (64,), jnp.float32)
    params["bn_mean"] = 0.05 * jax.random.normal(next(ki), (64,), jnp.float32)
    params["bn_var"] = jnp.abs(1.0 + 0.1 * jax.random.normal(next(ki), (64,), jnp.float32))
    params["fc2_w"] = 0.05 * jax.random.normal(next(ki), (num_classes, 64), jnp.float32)
    params["fc2_b"] = 0.01 * jax.random.normal(next(ki), (num_classes,), jnp.float32)
    return params


if __name__ == "__main__":
    # Small shapes consistent with the module: (batch, embed_size, seq_len)
    B, EMBED, L = 8, 128, 16
    FILTER_NUM = 64
    NUM_CLASSES = 8

    key = jax.random.PRNGKey(0)
    k_x, k_p = jax.random.split(key)
    x = jax.random.normal(k_x, (B, EMBED, L), jnp.float32)
    params = init_params(k_p, EMBED, FILTER_NUM, NUM_CLASSES)

    fwd = jax.jit(character_cnn_forward, static_argnums=2)
    out = jax.block_until_ready(fwd(x, params, NUM_CLASSES))

    ref = jax.block_until_ready(reference_forward(x, params, NUM_CLASSES))
    assert out.shape == (B, NUM_CLASSES)
    # bf16 matmul operands (f32 accumulation) -> loosened tolerance vs f32 reference.
    assert jnp.allclose(out, ref, atol=3e-2, rtol=3e-2), (
        f"max abs err {jnp.max(jnp.abs(out - ref))}")
    print("KERNEL_OK")
</pallas_src>

<mosaic_0001>
module attributes {stable_mosaic.version = 11 : i64} {
  func.func @classifier_kernel(%arg0: i32, %arg1: memref<8x32x128xbf16, #tpu.memory_space<vmem>>, %arg2: memref<640x256xbf16, #tpu.memory_space<vmem>>, %arg3: memref<1x256xf32, #tpu.memory_space<vmem>>, %arg4: memref<16x256xf32, #tpu.memory_space<vmem>>, %arg5: memref<256x128xbf16, #tpu.memory_space<vmem>>, %arg6: memref<1x128xf32, #tpu.memory_space<vmem>>, %arg7: memref<128x128xbf16, #tpu.memory_space<vmem>>, %arg8: memref<1x128xf32, #tpu.memory_space<vmem>>, %arg9: memref<8x128xf32, #tpu.memory_space<vmem>>) attributes {dimension_semantics = [#tpu.dimension_semantics<parallel>], iteration_bounds = array<i64: 1>, scalar_prefetch = 0 : i64, scratch_operands = 0 : i64, tpu.core_type = #tpu.core_type<tc>, window_params = [{transform_indices = @transform_0, window_bounds = array<i64: 8, 32, 128>}, {pipeline_mode = #tpu.pipeline_mode<synchronous>, transform_indices = @transform_1, window_bounds = array<i64: 640, 256>}, {pipeline_mode = #tpu.pipeline_mode<synchronous>, transform_indices = @transform_2, window_bounds = array<i64: 1, 256>}, {pipeline_mode = #tpu.pipeline_mode<synchronous>, transform_indices = @transform_3, window_bounds = array<i64: 16, 256>}, {pipeline_mode = #tpu.pipeline_mode<synchronous>, transform_indices = @transform_4, window_bounds = array<i64: 256, 128>}, {pipeline_mode = #tpu.pipeline_mode<synchronous>, transform_indices = @transform_5, window_bounds = array<i64: 1, 128>}, {pipeline_mode = #tpu.pipeline_mode<synchronous>, transform_indices = @transform_6, window_bounds = array<i64: 128, 128>}, {pipeline_mode = #tpu.pipeline_mode<synchronous>, transform_indices = @transform_7, window_bounds = array<i64: 1, 128>}, {transform_indices = @transform_8, window_bounds = array<i64: 8, 128>}]} {
    %c0 = arith.constant 0 : index
    %c0_0 = arith.constant 0 : index
    %c0_1 = arith.constant 0 : index
    %0 = vector.load %arg1[%c0, %c0_0, %c0_1] : memref<8x32x128xbf16, #tpu.memory_space<vmem>>, vector<8x32x128xbf16>
    %1 = vector.extract_strided_slice %0 {offsets = [0, 0, 0], sizes = [8, 16, 128], strides = [1, 1, 1]} : vector<8x32x128xbf16> to vector<8x16x128xbf16>
    %2 = vector.extract_strided_slice %0 {offsets = [0, 1, 0], sizes = [8, 16, 128], strides = [1, 1, 1]} : vector<8x32x128xbf16> to vector<8x16x128xbf16>
    %3 = vector.extract_strided_slice %0 {offsets = [0, 2, 0], sizes = [8, 16, 128], strides = [1, 1, 1]} : vector<8x32x128xbf16> to vector<8x16x128xbf16>
    %4 = vector.extract_strided_slice %0 {offsets = [0, 3, 0], sizes = [8, 16, 128], strides = [1, 1, 1]} : vector<8x32x128xbf16> to vector<8x16x128xbf16>
    %5 = vector.extract_strided_slice %0 {offsets = [0, 4, 0], sizes = [8, 16, 128], strides = [1, 1, 1]} : vector<8x32x128xbf16> to vector<8x16x128xbf16>
    %6 = tpu.concatenate %1, %2, %3, %4, %5 in 2 : vector<8x16x128xbf16>, vector<8x16x128xbf16>, vector<8x16x128xbf16>, vector<8x16x128xbf16>, vector<8x16x128xbf16> -> vector<8x16x640xbf16>
    %7 = vector.shape_cast %6 : vector<8x16x640xbf16> to vector<128x640xbf16>
    %c0_2 = arith.constant 0 : index
    %c0_3 = arith.constant 0 : index
    %8 = vector.load %arg2[%c0_2, %c0_3] : memref<640x256xbf16, #tpu.memory_space<vmem>>, vector<640x256xbf16>
    %cst = arith.constant dense<0.000000e+00> : vector<128x256xf32>
    %9 = tpu.matmul %7, %8, %cst {dimension_numbers = #tpu.dot_dimension_numbers<[1], [0], [0], [1], [0, 0, 1, 1], [], []>} : vector<128x640xbf16>, vector<640x256xbf16>, vector<128x256xf32> -> vector<128x256xf32>
    %10 = vector.shape_cast %9 : vector<128x256xf32> to vector<8x16x256xf32>
    %c0_4 = arith.constant 0 : index
    %c0_5 = arith.constant 0 : index
    %11 = vector.load %arg3[%c0_4, %c0_5] : memref<1x256xf32, #tpu.memory_space<vmem>>, vector<1x256xf32>
    %12 = vector.shape_cast %11 : vector<1x256xf32> to vector<1x1x256xf32>
    %13 = vector.broadcast %12 : vector<1x1x256xf32> to vector<8x16x256xf32>
    %14 = arith.addf %10, %13 : vector<8x16x256xf32>
    %cst_6 = arith.constant 0.000000e+00 : f32
    %15 = vector.broadcast %cst_6 : f32 to vector<8x16x256xf32>
    %16 = arith.maximumf %14, %15 : vector<8x16x256xf32>
    %c0_7 = arith.constant 0 : index
    %c0_8 = arith.constant 0 : index
    %17 = vector.load %arg4[%c0_7, %c0_8] : memref<16x256xf32, #tpu.memory_space<vmem>>, vector<16x256xf32>
    %18 = vector.shape_cast %17 : vector<16x256xf32> to vector<1x16x256xf32>
    %19 = vector.broadcast %18 : vector<1x16x256xf32> to vector<8x16x256xf32>
    %20 = arith.mulf %16, %19 : vector<8x16x256xf32>
    %cst_9 = arith.constant dense<0xFF800000> : vector<8x256xf32>
    %21 = vector.multi_reduction <maximumf>, %20, %cst_9 [1] : vector<8x16x256xf32> to vector<8x256xf32>
    %22 = arith.truncf %21 : vector<8x256xf32> to vector<8x256xbf16>
    %c0_10 = arith.constant 0 : index
    %c0_11 = arith.constant 0 : index
    %23 = vector.load %arg5[%c0_10, %c0_11] : memref<256x128xbf16, #tpu.memory_space<vmem>>, vector<256x128xbf16>
    %cst_12 = arith.constant dense<0.000000e+00> : vector<8x128xf32>
    %24 = tpu.matmul %22, %23, %cst_12 {dimension_numbers = #tpu.dot_dimension_numbers<[1], [0], [0], [1], [0, 0, 1, 1], [], []>} : vector<8x256xbf16>, vector<256x128xbf16>, vector<8x128xf32> -> vector<8x128xf32>
    %c0_13 = arith.constant 0 : index
    %c0_14 = arith.constant 0 : index
    %25 = vector.load %arg6[%c0_13, %c0_14] : memref<1x128xf32, #tpu.memory_space<vmem>>, vector<1x128xf32>
    %26 = vector.broadcast %25 : vector<1x128xf32> to vector<8x128xf32>
    %27 = arith.addf %24, %26 : vector<8x128xf32>
    %cst_15 = arith.constant 0.000000e+00 : f32
    %28 = vector.broadcast %cst_15 : f32 to vector<8x128xf32>
    %29 = arith.maximumf %27, %28 : vector<8x128xf32>
    %30 = arith.truncf %29 : vector<8x128xf32> to vector<8x128xbf16>
    %c0_16 = arith.constant 0 : index
    %c0_17 = arith.constant 0 : index
    %31 = vector.load %arg7[%c0_16, %c0_17] : memref<128x128xbf16, #tpu.memory_space<vmem>>, vector<128x128xbf16>
    %cst_18 = arith.constant dense<0.000000e+00> : vector<8x128xf32>
    %32 = tpu.matmul %30, %31, %cst_18 {dimension_numbers = #tpu.dot_dimension_numbers<[1], [0], [0], [1], [0, 0, 1, 1], [], []>} : vector<8x128xbf16>, vector<128x128xbf16>, vector<8x128xf32> -> vector<8x128xf32>
    %c0_19 = arith.constant 0 : index
    %c0_20 = arith.constant 0 : index
    %33 = vector.load %arg8[%c0_19, %c0_20] : memref<1x128xf32, #tpu.memory_space<vmem>>, vector<1x128xf32>
    %34 = vector.broadcast %33 : vector<1x128xf32> to vector<8x128xf32>
    %35 = arith.addf %32, %34 : vector<8x128xf32>
    %c0_21 = arith.constant 0 : index
    %c0_22 = arith.constant 0 : index
    %36 = vector.load %arg9[%c0_21, %c0_22] : memref<8x128xf32, #tpu.memory_space<vmem>>, vector<8x128xf32>
    tpu.vector_store %arg9[%c0_21, %c0_22], %35 {strides = array<i32>} : memref<8x128xf32, #tpu.memory_space<vmem>>, vector<8x128xf32>,
    return
  }
  func.func @transform_0(%arg0: i32) -> (i32, i32, i32) {
    %c0_i32 = arith.constant 0 : i32
    %c0_i32_0 = arith.constant 0 : i32
    %c0_i32_1 = arith.constant 0 : i32
    return %arg0, %c0_i32, %c0_i32_0 : i32, i32, i32
  }
  func.func @transform_1(%arg0: i32) -> (i32, i32) {
    %c0_i32 = arith.constant 0 : i32
    %c0_i32_0 = arith.constant 0 : i32
    %c0_i32_1 = arith.constant 0 : i32
    return %c0_i32, %c0_i32_0 : i32, i32
  }
  func.func @transform_2(%arg0: i32) -> (i32, i32) {
    %c0_i32 = arith.constant 0 : i32
    %c0_i32_0 = arith.constant 0 : i32
    %c0_i32_1 = arith.constant 0 : i32
    return %c0_i32, %c0_i32_0 : i32, i32
  }
  func.func @transform_3(%arg0: i32) -> (i32, i32) {
    %c0_i32 = arith.constant 0 : i32
    %c0_i32_0 = arith.constant 0 : i32
    %c0_i32_1 = arith.constant 0 : i32
    return %c0_i32, %c0_i32_0 : i32, i32
  }
  func.func @transform_4(%arg0: i32) -> (i32, i32) {
    %c0_i32 = arith.constant 0 : i32
    %c0_i32_0 = arith.constant 0 : i32
    %c0_i32_1 = arith.constant 0 : i32
    return %c0_i32, %c0_i32_0 : i32, i32
  }
  func.func @transform_5(%arg0: i32) -> (i32, i32) {
    %c0_i32 = arith.constant 0 : i32
    %c0_i32_0 = arith.constant 0 : i32
    %c0_i32_1 = arith.constant 0 : i32
    return %c0_i32, %c0_i32_0 : i32, i32
  }
  func.func @transform_6(%arg0: i32) -> (i32, i32) {
    %c0_i32 = arith.constant 0 : i32
    %c0_i32_0 = arith.constant 0 : i32
    %c0_i32_1 = arith.constant 0 : i32
    return %c0_i32, %c0_i32_0 : i32, i32
  }
  func.func @transform_7(%arg0: i32) -> (i32, i32) {
    %c0_i32 = arith.constant 0 : i32
    %c0_i32_0 = arith.constant 0 : i32
    %c0_i32_1 = arith.constant 0 : i32
    return %c0_i32, %c0_i32_0 : i32, i32
  }
  func.func @transform_8(%arg0: i32) -> (i32, i32) {
    %c0_i32 = arith.constant 0 : i32
    %c0_i32_0 = arith.constant 0 : i32
    return %arg0, %c0_i32 : i32, i32
  }
}

</mosaic_0001>

<bundles_post_ra>
// kernel: character_cnn_forward.1
= control target key start
LH: loop header
LB: loop body
LE: loop exit
PB: predicated region body
PF: predicated region fallthrough
CT: control target
= control target key end

     0   :  { %vm126_vm0 = vsmask.f32 7424  ;;  %s3753_s0 = inlined_call_operand.vmem [shape: bf16[8,32,128], index: 0, kind: input, shape index: {}]   ;;  %s3754_s1 = inlined_call_operand.vmem [shape: bf16[640,256], index: 1, kind: input, shape index: {}]   ;;  %s3755_s2 = inlined_call_operand.vmem [shape: f32[1,256], index: 2, kind: input, shape index: {}]   ;;  %s3756_s3 = inlined_call_operand.vmem [shape: f32[16,256], index: 3, kind: input, shape index: {}]   ;;  %s3757_s4 = inlined_call_operand.vmem [shape: bf16[256,128], index: 4, kind: input, shape index: {}]   ;;  %s3758_s5 = inlined_call_operand.vmem [shape: f32[1,128], index: 5, kind: input, shape index: {}]   ;;  %s3759_s6 = inlined_call_operand.vmem [shape: bf16[128,128], index: 6, kind: input, shape index: {}]   ;;  %s3760_s7 = inlined_call_operand.vmem [shape: f32[1,128], index: 7, kind: input, shape index: {}]   ;;  %s3761_s8 = inlined_call_operand.hbm [shape: f32[8,128], index: 8, kind: output, shape index: {}]  }
   0x1   :  { %v1987_v0 = vld [vmem:[%s3754_s1 + $0x70] sm:$0xf]  ;;  %v2368_v1 = vld [vmem:[%s3754_s1 + $0x74] sm:$0xf0]  ;;  %v1979_v5 = vld [vmem:[%s3754_s1 + $0x60] sm:$0xf] }
   0x2   :  { %v2051_v2 = vld [vmem:[%s3754_s1 + $0xf0] sm:$0xf]  ;;  %v1988_v3 = vor.u32 %v2368_v1, %v1987_v0  ;;  %v2384_v4 = vld [vmem:[%s3754_s1 + $0xf4] sm:$0xf0]  ;;  %v2366_v6 = vld [vmem:[%s3754_s1 + $0x64] sm:$0xf0] }
   0x3   :  { %v2052_v7 = vor.u32 %v2384_v4, %v2051_v2  ;;  %v2043_v8 = vld [vmem:[%s3754_s1 + $0xe0] sm:$0xf]  ;;  %v2382_v9 = vld [vmem:[%s3754_s1 + $0xe4] sm:$0xf0]  ;;  %v1980_v10 = vor.u32 %v2366_v6, %v1979_v5  ;;  %v1971_v12 = vld [vmem:[%s3754_s1 + $0x50] sm:$0xf] }
   0x4   :  { %858 = vmatpush.bf16.msra.mxu0 %v1988_v3  ;;  %2457 = vmatpush.bf16.msra.mxu3 %v1988_v3  ;;  %v2044_v11 = vor.u32 %v2382_v9, %v2043_v8  ;;  %v2364_v13 = vld [vmem:[%s3754_s1 + $0x54] sm:$0xf0]  ;;  %v2035_v14 = vld [vmem:[%s3754_s1 + $0xd0] sm:$0xf]  ;;  %v1963_v18 = vld [vmem:[%s3754_s1 + $0x40] sm:$0xf] }
   0x5   :  { %907 = vmatpush.bf16.msra.mxu1 %v2052_v7  ;;  %2465 = vmatpush.bf16.msra.mxu2 %v2052_v7  ;;  %v2380_v15 = vld [vmem:[%s3754_s1 + $0xd4] sm:$0xf0]  ;;  %v1972_v16 = vor.u32 %v2364_v13, %v1971_v12  ;;  %v2362_v19 = vld [vmem:[%s3754_s1 + $0x44] sm:$0xf0]  ;;  %v2027_v20 = vld [vmem:[%s3754_s1 + $0xc0] sm:$0xf] }
   0x6   :  { %v2036_v17 = vor.u32 %v2380_v15, %v2035_v14  ;;  %v2378_v21 = vld [vmem:[%s3754_s1 + $0xc4] sm:$0xf0]  ;;  %v1964_v22 = vor.u32 %v2362_v19, %v1963_v18  ;;  %v1955_v24 = vld [vmem:[%s3754_s1 + $0x30] sm:$0xf]  ;;  %v2360_v25 = vld [vmem:[%s3754_s1 + $0x34] sm:$0xf0] }
   0x7   :  { %v2028_v23 = vor.u32 %v2378_v21, %v2027_v20  ;;  %v2019_v26 = vld [vmem:[%s3754_s1 + $0xb0] sm:$0xf]  ;;  %v2376_v27 = vld [vmem:[%s3754_s1 + $0xb4] sm:$0xf0]  ;;  %v32_v28 = vld [vmem:[%s3753_s0 + $0x8] sm:$0xf]  ;;  %v1956_v30 = vor.u32 %v2360_v25, %v1955_v24 }
   0x8   :  { %859 = vmatpush.bf16.msra.mxu0 %v1980_v10  ;;  %2458 = vmatpush.bf16.msra.mxu3 %v1980_v10  ;;  %v47_v29 = vld [vmem:[%s3753_s0 + $0x58] sm:$0xf]  ;;  %v1947_v31 = vld [vmem:[%s3754_s1 + $0x20] sm:$0xf]  ;;  %v2358_v32 = vld [vmem:[%s3754_s1 + $0x24] sm:$0xf0]  ;;  %v2020_v34 = vor.u32 %v2376_v27, %v2019_v26  ;;  %v110_v37 = vunpack.c.l.b16 %v32_v28 }
   0x9   :  { %908 = vmatpush.bf16.msra.mxu1 %v2044_v11  ;;  %2466 = vmatpush.bf16.msra.mxu2 %v2044_v11  ;;  %v2011_v33 = vld [vmem:[%s3754_s1 + $0xa0] sm:$0xf]  ;;  %v2374_v35 = vld [vmem:[%s3754_s1 + $0xa4] sm:$0xf0]  ;;  %v2635_v38 = vld [vmem:[%s3753_s0 + $0x50] sm:$0xff]  ;;  %v115_v39 = vunpack.c.l.b16 %v47_v29  ;;  %v1948_v40 = vor.u32 %v2358_v32, %v1947_v31 }
   0xa   :  { %v2630_v36 = vld [vmem:[%s3753_s0] sm:$0xff]  ;;  %v2012_v41 = vor.u32 %v2374_v35, %v2011_v33  ;;  %v1939_v42 = vld [vmem:[%s3754_s1 + $0x10] sm:$0xf]  ;;  %v2356_v43 = vld [vmem:[%s3754_s1 + $0x14] sm:$0xf0]  ;;  %v2649_v46 = vpack.c.b16 %v110_v37, %v110_v37  ;;  %v190_v49 = vshll.u32 %v2635_v38, 16 }
   0xb   :  { %v2003_v44 = vld [vmem:[%s3754_s1 + $0x90] sm:$0xf]  ;;  %v2372_v45 = vld [vmem:[%s3754_s1 + $0x94] sm:$0xf0]  ;;  %v130_v47 = vshll.u32 %v2630_v36, 16  ;;  %v2652_v48 = vpack.c.b16 %v115_v39, %v115_v39  ;;  %v1940_v51 = vor.u32 %v2356_v43, %v1939_v42  ;;  %v128_v55 = vshrl.u32 %v2630_v36, 16 }
   0xc   :  { %860 = vmatpush.bf16.msra.mxu0 %v1972_v16  ;;  %2459 = vmatpush.bf16.msra.mxu3 %v1972_v16  ;;  %v1931_v50 = vld [vmem:[%s3754_s1] sm:$0xf]  ;;  %v2004_v52 = vor.u32 %v2372_v45, %v2003_v44  ;;  %v2354_v53 = vld [vmem:[%s3754_s1 + $0x4] sm:$0xf0]  ;;  %v188_v56 = vshrl.u32 %v2635_v38, 16  ;;  %v135_v59 = vshll.u32 %v2649_v46, 16 }
   0xd   :  { %909 = vmatpush.bf16.msra.mxu1 %v2036_v17  ;;  %2467 = vmatpush.bf16.msra.mxu2 %v2036_v17  ;;  %v1995_v54 = vld [vmem:[%s3754_s1 + $0x80] sm:$0xf]  ;;  %v2370_v57 = vld [vmem:[%s3754_s1 + $0x84] sm:$0xf0]  ;;  %v132_v58 = vrot.slane %v130_v47, 1  ;;  %v192_v60 = vrot.slane %v190_v49, 1  ;;  %v1932_v3 = vor.u32 %v2354_v53, %v1931_v50 }
   0xe   :  { %v195_v61 = vshll.u32 %v2652_v48, 16  ;;  %v2243_v62 = vld [vmem:[%s3754_s1 + $0x270] sm:$0xf]  ;;  %v2432_v63 = vld [vmem:[%s3754_s1 + $0x274] sm:$0xf0]  ;;  %v1996_v4 = vor.u32 %v2370_v57, %v1995_v54  ;;  %v137_v9 = vrot.slane %v135_v59, 1 }
   0xf   :  { %v2367_v0 = vld [vmem:[%s3754_s1 + $0x74] sm:$0xf]  ;;  %v1989_v1 = vld [vmem:[%s3754_s1 + $0x78] sm:$0xf0]  ;;  %v35_v2 = vld [vmem:[%s3753_s0 + $0x18] sm:$0xf]  ;;  %v133_v8 = vor.u32 %v132_v58, %v128_v55  ;;  %v193_v10 = vor.u32 %v192_v60, %v188_v56  ;;  %v2244_v14 = vor.u32 %v2432_v63, %v2243_v62 }
  0x10   :  { %861 = vmatpush.bf16.msra.mxu0 %v1964_v22  ;;  %2460 = vmatpush.bf16.msra.mxu3 %v1964_v22  ;;  %v50_v5 = vld [vmem:[%s3753_s0 + $0x68] sm:$0xf]  ;;  %v2115_v6 = vld [vmem:[%s3754_s1 + $0x170] sm:$0xf]  ;;  %v2400_v7 = vld [vmem:[%s3754_s1 + $0x174] sm:$0xf0]  ;;  %v1992_v15 = vor.u32 %v2367_v0, %v1989_v1 }
  0x11   :  { %910 = vmatpush.bf16.msra.mxu1 %v2028_v23  ;;  %2468 = vmatpush.bf16.msra.mxu2 %v2028_v23  ;;  %v197_v11 = vrot.slane %v195_v61, 1  ;;  %v2235_v12 = vld [vmem:[%s3754_s1 + $0x260] sm:$0xf]  ;;  %v2179_v13 = vld [vmem:[%s3754_s1 + $0x1f0] sm:$0xf] }
  0x12   :  { %v2416_v16 = vld [vmem:[%s3754_s1 + $0x1f4] sm:$0xf0] }
  0x14   :  { %862 = vmatpush.bf16.msra.mxu0 %v1956_v30  ;;  %2461 = vmatpush.bf16.msra.mxu3 %v1956_v30 }
  0x15   :  { %911 = vmatpush.bf16.msra.mxu1 %v2020_v34  ;;  %2469 = vmatpush.bf16.msra.mxu2 %v2020_v34 }
  0x18   :  { %863 = vmatpush.bf16.msra.mxu0 %v1948_v40  ;;  %2462 = vmatpush.bf16.msra.mxu3 %v1948_v40 }
  0x19   :  { %912 = vmatpush.bf16.msra.mxu1 %v2012_v41  ;;  %2470 = vmatpush.bf16.msra.mxu2 %v2012_v41 }
  0x1c   :  { %864 = vmatpush.bf16.msra.mxu0 %v1940_v51  ;;  %2463 = vmatpush.bf16.msra.mxu3 %v1940_v51 }
  0x1d   :  { %913 = vmatpush.bf16.msra.mxu1 %v2004_v52  ;;  %2471 = vmatpush.bf16.msra.mxu2 %v2004_v52 }
  0x1e   :  { %13 = vsyncpa [#allocation3], 0  ;;  %v2430_v17 = vld [vmem:[%s3754_s1 + $0x264] sm:$0xf0]  ;;  %v2365_v18 = vld [vmem:[%s3754_s1 + $0x64] sm:$0xf]  ;;  %v111_v21 = vunpack.c.l.b16 %v35_v2  ;;  %v116_v22 = vunpack.c.l.b16 %v50_v5  ;;  %v2116_v23 = vor.u32 %v2400_v7, %v2115_v6  ;;  %v2731_v24 = vsel %vm126_vm0, %v133_v8, %v137_v9 }
  0x1f   :  { %v1981_v19 = vld [vmem:[%s3754_s1 + $0x68] sm:$0xf0]  ;;  %v2728_v20 = vld [vmem:[%s3753_s0 + $0x10] sm:$0xff]  ;;  %v2734_v25 = vsel %vm126_vm0, %v193_v10, %v197_v11  ;;  %v2739_v26 = vld [vmem:[%s3753_s0 + $0x60] sm:$0xff]  ;;  %v2180_v27 = vor.u32 %v2416_v16, %v2179_v13  ;;  %v2236_v30 = vor.u32 %v2430_v17, %v2235_v12  ;;  %vm264_vm1 = vsmask.f32 6400 }
  0x20   :  { %865 = vmatpush.bf16.msra.mxu0 %v1932_v3  ;;  %2464 = vmatpush.bf16.msra.mxu3 %v1932_v3  ;;  %v2227_v28 = vld [vmem:[%s3754_s1 + $0x250] sm:$0xf]  ;;  %v2107_v29 = vld [vmem:[%s3754_s1 + $0x160] sm:$0xf]  ;;  %v1984_v31 = vor.u32 %v2365_v18, %v1981_v19  ;;  %v2398_v32 = vld [vmem:[%s3754_s1 + $0x164] sm:$0xf0]  ;;  %v2769_v40 = vpack.c.b16 %v111_v21, %v111_v21  ;;  %v2772_v42 = vpack.c.b16 %v116_v22, %v116_v22 }
  0x21   :  { %914 = vmatpush.bf16.msra.mxu1 %v1996_v4  ;;  %2472 = vmatpush.bf16.msra.mxu2 %v1996_v4  ;;  %v2171_v33 = vld [vmem:[%s3754_s1 + $0x1e0] sm:$0xf]  ;;  %v2414_v34 = vld [vmem:[%s3754_s1 + $0x1e4] sm:$0xf0]  ;;  %v2428_v35 = vld [vmem:[%s3754_s1 + $0x254] sm:$0xf0]  ;;  %v2108_v44 = vor.u32 %v2398_v32, %v2107_v29 }
  0x22   :  { %v2363_v37 = vld [vmem:[%s3754_s1 + $0x54] sm:$0xf]  ;;  %v1973_v39 = vld [vmem:[%s3754_s1 + $0x58] sm:$0xf0]  ;;  %v142_v41 = vshll.u32 %v2728_v20, 16  ;;  %v202_v43 = vshll.u32 %v2739_v26, 16  ;;  %v2172_v45 = vor.u32 %v2414_v34, %v2171_v33  ;;  %v2228_v52 = vor.u32 %v2428_v35, %v2227_v28 }
  0x23   :  { %866 = vmatmul.bf16.vlgmr.msra.gmra.mxu0 %v2630_v36  ;;  %891 = vmatmul.bf16.vlgmr.msra.gmra.mxu3 %v2635_v38  ;;  %v2099_v50 = vld [vmem:[%s3754_s1 + $0x150] sm:$0xf]  ;;  %v2396_v51 = vld [vmem:[%s3754_s1 + $0x154] sm:$0xf0]  ;;  %v1976_v53 = vor.u32 %v2363_v37, %v1973_v39  ;;  %v2219_v58 = vld [vmem:[%s3754_s1 + $0x240] sm:$0xf] }
  0x24   :  { %1054 = vmatpush.bf16.msrb.mxu0 %v2244_v14  ;;  %915 = vmatmul.bf16.vlgmr.msra.gmra.mxu1 %v2731_v24  ;;  %v2163_v54 = vld [vmem:[%s3754_s1 + $0x1d0] sm:$0xf]  ;;  %v2412_v57 = vld [vmem:[%s3754_s1 + $0x1d4] sm:$0xf0]  ;;  %v2426_v60 = vld [vmem:[%s3754_s1 + $0x244] sm:$0xf0]  ;;  %v2100_v6 = vor.u32 %v2396_v51, %v2099_v50 }
  0x25   :  { %1103 = vmatpush.bf16.msrb.mxu1 %v1992_v15  ;;  %940 = vmatmul.bf16.vlgmr.msra.gmra.mxu2 %v2734_v25  ;;  %v2361_v62 = vld [vmem:[%s3754_s1 + $0x44] sm:$0xf]  ;;  %v1965_v63 = vld [vmem:[%s3754_s1 + $0x48] sm:$0xf0]  ;;  %v140_v0 = vshrl.u32 %v2728_v20, 16  ;;  %v144_v1 = vrot.slane %v142_v41, 1  ;;  %v2164_v7 = vor.u32 %v2412_v57, %v2163_v54  ;;  %v2220_v10 = vor.u32 %v2426_v60, %v2219_v58 }
  0x26   :  { %956 = vmatpush.bf16.msrb.mxu2 %v2116_v23  ;;  %1005 = vmatpush.bf16.msrb.mxu3 %v2180_v27  ;;  %v147_v2 = vshll.u32 %v2769_v40, 16  ;;  %v207_v3 = vshll.u32 %v2772_v42, 16  ;;  %v200_v4 = vshrl.u32 %v2739_v26, 16  ;;  %v204_v5 = vrot.slane %v202_v43, 1  ;;  %v2091_v8 = vld [vmem:[%s3754_s1 + $0x140] sm:$0xf] }
  0x27   :  { %v2394_v9 = vld [vmem:[%s3754_s1 + $0x144] sm:$0xf0]  ;;  %v2155_v11 = vld [vmem:[%s3754_s1 + $0x1c0] sm:$0xf]  ;;  %v1968_v13 = vor.u32 %v2361_v62, %v1965_v63  ;;  %v2211_v14 = vld [vmem:[%s3754_s1 + $0x230] sm:$0xf]  ;;  %v145_v18 = vor.u32 %v144_v1, %v140_v0 }
  0x28   :  { %1055 = vmatpush.bf16.msrb.mxu0 %v2236_v30  ;;  %v2410_v12 = vld [vmem:[%s3754_s1 + $0x1c4] sm:$0xf0]  ;;  %v2424_v15 = vld [vmem:[%s3754_s1 + $0x234] sm:$0xf0]  ;;  %v2359_v16 = vld [vmem:[%s3754_s1 + $0x34] sm:$0xf]  ;;  %v205_v22 = vor.u32 %v204_v5, %v200_v4  ;;  %v2092_v23 = vor.u32 %v2394_v9, %v2091_v8 }
  0x29   :  { %1104 = vmatpush.bf16.msrb.mxu1 %v1984_v31  ;;  %v1957_v17 = vld [vmem:[%s3754_s1 + $0x38] sm:$0xf0]  ;;  %v149_v19 = vrot.slane %v147_v2, 1  ;;  %v209_v21 = vrot.slane %v207_v3, 1  ;;  %v2156_v27 = vor.u32 %v2410_v12, %v2155_v11  ;;  %v38_v28 = vld [vmem:[%s3753_s0 + $0x28] sm:$0xf]  ;;  %v2212_v34 = vor.u32 %v2424_v15, %v2211_v14 }
  0x2a   :  { %957 = vmatpush.bf16.msrb.mxu2 %v2108_v44  ;;  %1006 = vmatpush.bf16.msrb.mxu3 %v2172_v45  ;;  %v53_v29 = vld [vmem:[%s3753_s0 + $0x78] sm:$0xf]  ;;  %v2083_v30 = vld [vmem:[%s3754_s1 + $0x130] sm:$0xf]  ;;  %v1960_v35 = vor.u32 %v2359_v16, %v1957_v17  ;;  %v2860_v37 = vld [vmem:[%s3753_s0 + $0x20] sm:$0xff]  ;;  %v112_v45 = vunpack.c.l.b16 %v38_v28  ;;  %vm231_vm2 = vcmask 1046528  }
  0x2b   :  { %v2392_v31 = vld [vmem:[%s3754_s1 + $0x134] sm:$0xf0]  ;;  %v2147_v32 = vld [vmem:[%s3754_s1 + $0x1b0] sm:$0xf]  ;;  %v2868_v44 = vsel %vm126_vm0, %v145_v18, %v149_v19  ;;  %v117_v50 = vunpack.c.l.b16 %v53_v29  ;;  %v2871_v51 = vsel %vm126_vm0, %v205_v22, %v209_v21  ;;  %v2075_v54 = vld [vmem:[%s3754_s1 + $0x120] sm:$0xf] }
  0x2c   :  { %1056 = vmatpush.bf16.msrb.mxu0 %v2228_v52  ;;  %v2408_v33 = vld [vmem:[%s3754_s1 + $0x1b4] sm:$0xf0]  ;;  %v2865_v39 = vld [vmem:[%s3753_s0 + $0x70] sm:$0xff]  ;;  %v2084_v52 = vor.u32 %v2392_v31, %v2083_v30  ;;  %v2390_v57 = vld [vmem:[%s3754_s1 + $0x124] sm:$0xf0]  ;;  %v154_v62 = vshll.u32 %v2860_v37, 16  ;;  %v2891_v1 = vpack.c.b16 %v112_v45, %v112_v45 }
  0x2d   :  { %1105 = vmatpush.bf16.msrb.mxu1 %v1976_v53  ;;  %v2148_v53 = vor.u32 %v2408_v33, %v2147_v32  ;;  %v2139_v58 = vld [vmem:[%s3754_s1 + $0x1a0] sm:$0xf]  ;;  %v2406_v60 = vld [vmem:[%s3754_s1 + $0x1a4] sm:$0xf0]  ;;  %v214_v63 = vshll.u32 %v2865_v39, 16  ;;  %v2893_v5 = vpack.c.b16 %v117_v50, %v117_v50  ;;  %v2076_v12 = vor.u32 %v2390_v57, %v2075_v54  ;;  %s2503_s13 = smov [#allocation2]  }
  0x2e   :  { %958 = vmatpush.bf16.msrb.mxu2 %v2100_v6  ;;  %1007 = vmatpush.bf16.msrb.mxu3 %v2164_v7  ;;  %v2067_v6 = vld [vmem:[%s3754_s1 + $0x110] sm:$0xf]  ;;  %v2388_v7 = vld [vmem:[%s3754_s1 + $0x114] sm:$0xf0]  ;;  %v2422_v11 = vld [vmem:[%s3754_s1 + $0x224] sm:$0xf0] }
  0x2f   :  { %v2131_v8 = vld [vmem:[%s3754_s1 + $0x190] sm:$0xf]  ;;  %v2404_v9 = vld [vmem:[%s3754_s1 + $0x194] sm:$0xf0]  ;;  %v2357_v15 = vld [vmem:[%s3754_s1 + $0x24] sm:$0xf] }
  0x30   :  { %1057 = vmatpush.bf16.msrb.mxu0 %v2220_v10  ;;  %v2203_v10 = vld [vmem:[%s3754_s1 + $0x220] sm:$0xf]  ;;  %v1949_v16 = vld [vmem:[%s3754_s1 + $0x28] sm:$0xf0]  ;;  %v2195_v17 = vld [vmem:[%s3754_s1 + $0x210] sm:$0xf] }
  0x31   :  { %1106 = vmatpush.bf16.msrb.mxu1 %v1968_v13  ;;  %v2140_v13 = vor.u32 %v2406_v60, %v2139_v58  ;;  %v2204_v14 = vor.u32 %v2422_v11, %v2203_v10  ;;  %v1952_v18 = vor.u32 %v2357_v15, %v1949_v16  ;;  %v2420_v19 = vld [vmem:[%s3754_s1 + $0x214] sm:$0xf0]  ;;  %v2355_v21 = vld [vmem:[%s3754_s1 + $0x14] sm:$0xf]  ;;  %v1941_v22 = vld [vmem:[%s3754_s1 + $0x18] sm:$0xf0] }
  0x32   :  { %959 = vmatpush.bf16.msrb.mxu2 %v2092_v23  ;;  %1008 = vmatpush.bf16.msrb.mxu3 %v2156_v27  ;;  %v152_v23 = vshrl.u32 %v2860_v37, 16  ;;  %v2196_v27 = vor.u32 %v2420_v19, %v2195_v17  ;;  %v156_v28 = vrot.slane %v154_v62, 1  ;;  %v212_v29 = vshrl.u32 %v2865_v39, 16  ;;  %v2059_v45 = vld [vmem:[%s3754_s1 + $0x100] sm:$0xf]  ;;  %s1886_s14 = sshll.u32 %s2503_s13, 4  ;;  %s1887_s14 = int_to_ptr.vmem [resolvable:$true] %s1886_s14 }
  0x33   :  { %871 = vmatmul.bf16.gmra.mxu0 %v2728_v20  ;;  %896 = vmatmul.bf16.gmra.mxu3 %v2739_v26  ;;  %v216_v30 = vrot.slane %v214_v63, 1  ;;  %v1944_v31 = vor.u32 %v2355_v21, %v1941_v22  ;;  %v159_v32 = vshll.u32 %v2891_v1, 16  ;;  %v219_v33 = vshll.u32 %v2893_v5, 16  ;;  %v2386_v50 = vld [vmem:[%s3754_s1 + $0x104] sm:$0xf0]  ;;  %s1888_s16 = sshll.u32 %s3761_s8, 4  ;;  %s1889_s16 = int_to_ptr.hbm [resolvable:$true] %s1888_s16 }
  0x34   :  { %1058 = vmatpush.bf16.msrb.mxu0 %v2212_v34  ;;  %920 = vmatmul.bf16.gmra.mxu1 %v2868_v44  ;;  %v2068_v34 = vor.u32 %v2388_v7, %v2067_v6  ;;  %v157_v54 = vor.u32 %v156_v28, %v152_v23  ;;  %v2060_v6 = vor.u32 %v2386_v50, %v2059_v45  ;;  %v2187_v15 = vld [vmem:[%s3754_s1 + $0x200] sm:$0xf]  ;;  %v2418_v16 = vld [vmem:[%s3754_s1 + $0x204] sm:$0xf0]  ;;  %v2383_v17 = vld [vmem:[%s3754_s1 + $0xf4] sm:$0xf] }
  0x35   :  { %1107 = vmatpush.bf16.msrb.mxu1 %v1960_v35  ;;  %945 = vmatmul.bf16.gmra.mxu2 %v2871_v51  ;;  %v2132_v35 = vor.u32 %v2404_v9, %v2131_v8  ;;  %v217_v57 = vor.u32 %v216_v30, %v212_v29  ;;  %v161_v58 = vrot.slane %v159_v32, 1  ;;  %v221_v60 = vrot.slane %v219_v33, 1  ;;  %v41_v8 = vld [vmem:[%s3753_s0 + $0x38] sm:$0xf]  ;;  %v2965_v9 = vld [vmem:[%s3753_s0 + $0x30] sm:$0xff] }
  0x36   :  { %960 = vmatpush.bf16.msrb.mxu2 %v2084_v52  ;;  %1009 = vmatpush.bf16.msrb.mxu3 %v2148_v53  ;;  %v2123_v52 = vld [vmem:[%s3754_s1 + $0x180] sm:$0xf]  ;;  %v2402_v53 = vld [vmem:[%s3754_s1 + $0x184] sm:$0xf0]  ;;  %v2188_v19 = vor.u32 %v2418_v16, %v2187_v15  ;;  %v2053_v21 = vld [vmem:[%s3754_s1 + $0xf8] sm:$0xf0] }
  0x37   :  { %v2124_v7 = vor.u32 %v2402_v53, %v2123_v52  ;;  %v2968_v10 = vsel %vm126_vm0, %v157_v54, %v161_v58  ;;  %v2971_v11 = vsel %vm126_vm0, %v217_v57, %v221_v60  ;;  %v2353_v22 = vld [vmem:[%s3754_s1 + $0x4] sm:$0xf]  ;;  %v2056_v28 = vor.u32 %v2383_v17, %v2053_v21 }
  0x38   :  { %1059 = vmatpush.bf16.msrb.mxu0 %v2204_v14  ;;  %v268_v14 = vshrl.u32 %v2649_v46, 16  ;;  %v265_v52 = vrot.slane %v128_v55, 1  ;;  %v266_v53 = vrot.slane %v130_v47, 2  ;;  %v271_v57 = vrot.slane %v135_v59, 2  ;;  %v44_v59 = vld [vmem:[%s3753_s0 + $0x48] sm:$0xf] }
  0x39   :  { %1108 = vmatpush.bf16.msrb.mxu1 %v1952_v18  ;;  %v233_v47 = vrot.slane %v2649_v46, 1  ;;  %v114_v17 = vunpack.c.l.b16 %v44_v59  ;;  %v277_v21 = vshrl.u32 %v2769_v40, 16  ;;  %vm345_vm3 = vcmask 1045504  }
  0x3a   :  { %961 = vmatpush.bf16.msrb.mxu2 %v2076_v12  ;;  %1010 = vmatpush.bf16.msrb.mxu3 %v2140_v13  ;;  %v113_v12 = vunpack.c.l.b16 %v41_v8  ;;  %v166_v13 = vshll.u32 %v2965_v9, 16  ;;  %v270_v54 = vrot.slane %v268_v14, 1  ;;  %v232_v8 = vrot.slane %v2630_v36, 1 }
  0x3b   :  { %vm1650_vm4 = vcmask 1041409   ;;  %vm1652_vm5 = vcmask 1042434   ;;  %vm1654_vm6 = vcmask 1043459   ;;  %vm1656_vm7 = vcmask 1044484  }
  0x3c   :  { %1060 = vmatpush.bf16.msrb.mxu0 %v2196_v27  ;;  %v2988_v18 = vpack.c.b16 %v113_v12, %v113_v12  ;;  %v1933_v27 = vld [vmem:[%s3754_s1 + $0x8] sm:$0xf0]  ;;  %v168_v45 = vrot.slane %v166_v13, 1  ;;  %v3027_v12 = vld [vmem:[%s3753_s0 + $0x40] sm:$0xff]  ;;  %v3036_v16 = vsel %vm231_vm2, %v232_v8, %v233_v47  ;;  %v280_v8 = vrot.slane %v147_v2, 2 }
  0x3d   :  { %1109 = vmatpush.bf16.msrb.mxu1 %v1944_v31  ;;  %v1936_v30 = vor.u32 %v2353_v22, %v1933_v27  ;;  %v2399_v31 = vld [vmem:[%s3754_s1 + $0x174] sm:$0xf]  ;;  %v2181_v27 = vld [vmem:[%s3754_s1 + $0x1f8] sm:$0xf0]  ;;  %v176_v47 = vshrl.u32 %v3027_v12, 16  ;;  %v235_v2 = vrot.slane %v2728_v20, 1 }
  0x3e   :  { %962 = vmatpush.bf16.msrb.mxu2 %v2068_v34  ;;  %1011 = vmatpush.bf16.msrb.mxu3 %v2132_v35  ;;  %v2117_v34 = vld [vmem:[%s3754_s1 + $0x178] sm:$0xf0]  ;;  %v164_v35 = vshrl.u32 %v2965_v9, 16  ;;  %v171_v58 = vshll.u32 %v2988_v18, 16  ;;  %v2415_v22 = vld [vmem:[%s3754_s1 + $0x1f4] sm:$0xf] }
  0x3f   :  { %v2120_v50 = vor.u32 %v2399_v31, %v2117_v34  ;;  %v2184_v31 = vor.u32 %v2415_v22, %v2181_v27  ;;  %v2245_v34 = vld [vmem:[%s3754_s1 + $0x278] sm:$0xf0]  ;;  %vm1658_vm8 = vcmask 1045509   ;;  %vm1660_vm9 = vcmask 1046534  }
  0x40   :  { %1061 = vmatpush.bf16.msrb.mxu0 %v2188_v19  ;;  %v169_v60 = vor.u32 %v168_v45, %v164_v35  ;;  %v173_v55 = vrot.slane %v171_v58, 1  ;;  %v178_v19 = vshll.u32 %v3027_v12, 16  ;;  %v2381_v45 = vld [vmem:[%s3754_s1 + $0xe4] sm:$0xf]  ;;  %vm1662_vm10 = vcmask 1047559  }
  0x41   :  { %1110 = vmatpush.bf16.msrb.mxu1 %v1936_v30  ;;  %v3053_v30 = vpack.c.b16 %v114_v17, %v114_v17 }
  0x42   :  { %963 = vmatpush.bf16.msrb.mxu2 %v2060_v6  ;;  %1012 = vmatpush.bf16.msrb.mxu3 %v2124_v7  ;;  %v267_v6 = vor.u32 %v266_v53, %v265_v52  ;;  %v272_v7 = vor.u32 %v271_v57, %v270_v54  ;;  %v3033_v15 = vsel %vm126_vm0, %v169_v60, %v173_v55  ;;  %v2397_v54 = vld [vmem:[%s3754_s1 + $0x164] sm:$0xf]  ;;  %v2109_v57 = vld [vmem:[%s3754_s1 + $0x168] sm:$0xf0]  ;;  %v279_v55 = vrot.slane %v277_v21, 1 }
  0x43   :  { %876 = vmatmul.bf16.gmra.mxu0 %v2860_v37  ;;  %901 = vmatmul.bf16.gmra.mxu3 %v2865_v39  ;;  %v2112_v60 = vor.u32 %v2397_v54, %v2109_v57  ;;  %v180_v59 = vrot.slane %v178_v19, 1  ;;  %v183_v17 = vshll.u32 %v3053_v30, 16  ;;  %v236_v21 = vrot.slane %v2769_v40, 1  ;;  %v2237_v57 = vld [vmem:[%s3754_s1 + $0x268] sm:$0xf0] }
  0x44   :  { %925 = vmatmul.bf16.gmra.mxu1 %v2968_v10  ;;  %v3030_v14 = vsel %vm264_vm1, %v267_v6, %v272_v7  ;;  %1250 = vmatpush.bf16.msra.mxu0 %v2184_v31  ;;  %v274_v6 = vrot.slane %v140_v0, 1  ;;  %v275_v7 = vrot.slane %v142_v41, 2  ;;  %v281_v27 = vor.u32 %v280_v8, %v279_v55  ;;  %v2395_v8 = vld [vmem:[%s3754_s1 + $0x154] sm:$0xf] }
  0x45   :  { %950 = vmatmul.bf16.gmra.mxu2 %v2971_v11  ;;  %v181_v0 = vor.u32 %v180_v59, %v176_v47  ;;  %v185_v41 = vrot.slane %v183_v17, 1  ;;  %v2101_v59 = vld [vmem:[%s3754_s1 + $0x158] sm:$0xf0] }
  0x46   :  { %1152 = vmatpush.bf16.msra.mxu2 %v2056_v28  ;;  %1201 = vmatpush.bf16.msra.mxu3 %v2120_v50  ;;  %v2431_v28 = vld [vmem:[%s3754_s1 + $0x274] sm:$0xf]  ;;  %v2045_v50 = vld [vmem:[%s3754_s1 + $0xe8] sm:$0xf0]  ;;  %v276_v22 = vor.u32 %v275_v7, %v274_v6  ;;  %v2037_v6 = vld [vmem:[%s3754_s1 + $0xd8] sm:$0xf0] }
  0x47   :  { %v2248_v52 = vor.u32 %v2431_v28, %v2245_v34  ;;  %v2048_v53 = vor.u32 %v2381_v45, %v2045_v50  ;;  %v3090_v31 = vsel %vm126_vm0, %v181_v0, %v185_v41  ;;  %v3093_v34 = vsel %vm231_vm2, %v235_v2, %v236_v21  ;;  %v2413_v50 = vld [vmem:[%s3754_s1 + $0x1e4] sm:$0xf] }
  0x48   :  { %v3087_v28 = vsel %vm264_vm1, %v276_v22, %v281_v27  ;;  %v286_v45 = vshrl.u32 %v2891_v1, 16  ;;  %v2104_v22 = vor.u32 %v2395_v8, %v2101_v59  ;;  %v283_v27 = vrot.slane %v152_v23, 1  ;;  %v2029_v8 = vld [vmem:[%s3754_s1 + $0xc8] sm:$0xf0] }
  0x49   :  { %1299 = vmatpush.bf16.msra.mxu1 %v2248_v52  ;;  %v2173_v52 = vld [vmem:[%s3754_s1 + $0x1e8] sm:$0xf0]  ;;  %v284_v0 = vrot.slane %v154_v62, 2  ;;  %v289_v2 = vrot.slane %v159_v32, 2  ;;  %v346_v21 = vrot.slane %v2630_v36, 2  ;;  %v239_v23 = vrot.slane %v2891_v1, 1 }
  0x4a   :  { %1153 = vmatpush.bf16.msra.mxu2 %v2048_v53  ;;  %1202 = vmatpush.bf16.msra.mxu3 %v2112_v60  ;;  %v2429_v53 = vld [vmem:[%s3754_s1 + $0x264] sm:$0xf]  ;;  %v2176_v54 = vor.u32 %v2413_v50, %v2173_v52  ;;  %v2379_v60 = vld [vmem:[%s3754_s1 + $0xd4] sm:$0xf]  ;;  %v288_v41 = vrot.slane %v286_v45, 1  ;;  %v347_v50 = vrot.slane %v2649_v46, 2 }
  0x4b   :  { %v2240_v7 = vor.u32 %v2429_v53, %v2237_v57  ;;  %v2040_v55 = vor.u32 %v2379_v60, %v2037_v6  ;;  %v285_v52 = vor.u32 %v284_v0, %v283_v27  ;;  %v295_v46 = vshrl.u32 %v2988_v18, 16  ;;  %v2411_v57 = vld [vmem:[%s3754_s1 + $0x1d4] sm:$0xf]  ;;  %v2165_v60 = vld [vmem:[%s3754_s1 + $0x1d8] sm:$0xf0] }
  0x4c   :  { %1251 = vmatpush.bf16.msra.mxu0 %v2176_v54  ;;  %v290_v53 = vor.u32 %v289_v2, %v288_v41  ;;  %v238_v54 = vrot.slane %v2860_v37, 1  ;;  %v3135_v62 = vsel %vm345_vm3, %v346_v21, %v347_v50  ;;  %v2427_v6 = vld [vmem:[%s3754_s1 + $0x254] sm:$0xf]  ;;  %v2393_v27 = vld [vmem:[%s3754_s1 + $0x144] sm:$0xf]  ;;  %v292_v2 = vrot.slane %v164_v35, 1 }
  0x4d   :  { %1300 = vmatpush.bf16.msra.mxu1 %v2240_v7  ;;  %v2168_v7 = vor.u32 %v2411_v57, %v2165_v60  ;;  %v2093_v0 = vld [vmem:[%s3754_s1 + $0x148] sm:$0xf0]  ;;  %v293_v21 = vrot.slane %v166_v13, 2  ;;  %v297_v50 = vrot.slane %v295_v46, 1  ;;  %v241_v60 = vrot.slane %v2965_v9, 1 }
  0x4e   :  { %1154 = vmatpush.bf16.msra.mxu2 %v2040_v55  ;;  %1203 = vmatpush.bf16.msra.mxu3 %v2104_v22  ;;  %v3138_v45 = vsel %vm264_vm1, %v285_v52, %v290_v53  ;;  %v3141_v32 = vsel %vm231_vm2, %v238_v54, %v239_v23  ;;  %v2229_v55 = vld [vmem:[%s3754_s1 + $0x258] sm:$0xf0]  ;;  %v2096_v41 = vor.u32 %v2393_v27, %v2093_v0  ;;  %v298_v52 = vrot.slane %v171_v58, 2  ;;  %v2409_v46 = vld [vmem:[%s3754_s1 + $0x1c4] sm:$0xf] }
  0x4f   :  { %v2232_v59 = vor.u32 %v2427_v6, %v2229_v55  ;;  %v349_v53 = vrot.slane %v2728_v20, 2  ;;  %v350_v54 = vrot.slane %v2769_v40, 2  ;;  %v294_v23 = vor.u32 %v293_v21, %v292_v2  ;;  %v2425_v55 = vld [vmem:[%s3754_s1 + $0x244] sm:$0xf]  ;;  %v2021_v2 = vld [vmem:[%s3754_s1 + $0xb8] sm:$0xf0] }
  0x50   :  { %1252 = vmatpush.bf16.msra.mxu0 %v2168_v7  ;;  %v299_v57 = vor.u32 %v298_v52, %v297_v50  ;;  %v242_v35 = vrot.slane %v2988_v18, 1  ;;  %v304_v40 = vshrl.u32 %v3053_v30, 16  ;;  %v2157_v7 = vld [vmem:[%s3754_s1 + $0x1c8] sm:$0xf0]  ;;  %v307_v0 = vrot.slane %v183_v17, 2 }
  0x51   :  { %1301 = vmatpush.bf16.msra.mxu1 %v2232_v59  ;;  %v3183_v6 = vsel %vm345_vm3, %v349_v53, %v350_v54  ;;  %v352_v21 = vrot.slane %v2860_v37, 2  ;;  %v2085_v17 = vld [vmem:[%s3754_s1 + $0x138] sm:$0xf0]  ;;  %v353_v50 = vrot.slane %v2891_v1, 2  ;;  %v313_v1 = vshrl.u32 %v2652_v48, 16 }
  0x52   :  { %1204 = vmatpush.bf16.msra.mxu3 %v2096_v41  ;;  %v3186_v13 = vsel %vm264_vm1, %v294_v23, %v299_v57  ;;  %v3189_v58 = vsel %vm231_vm2, %v241_v60, %v242_v35  ;;  %v306_v27 = vrot.slane %v304_v40, 1  ;;  %v2375_v41 = vld [vmem:[%s3754_s1 + $0xb4] sm:$0xf]  ;;  %v244_v23 = vrot.slane %v3027_v12, 1 }
  0x53   :  { %881 = vmatmul.bf16.gmra.mxu0 %v2965_v9  ;;  %1013 = vmatmul.bf16.vlgmr.msrb.gmra.mxu3 %v3030_v14  ;;  %v245_v57 = vrot.slane %v3053_v30, 1  ;;  %v3231_v60 = vsel %vm345_vm3, %v352_v21, %v353_v50  ;;  %v247_v50 = vrot.slane %v2635_v38, 1  ;;  %v322_v38 = vshrl.u32 %v2772_v42, 16 }
  0x54   :  { %930 = vmatmul.bf16.gmra.mxu1 %v3033_v15  ;;  %v308_v53 = vor.u32 %v307_v0, %v306_v27  ;;  %v316_v27 = vrot.slane %v195_v61, 2  ;;  %v2373_v0 = vld [vmem:[%s3754_s1 + $0xa4] sm:$0xf]  ;;  %v2077_v61 = vld [vmem:[%s3754_s1 + $0x128] sm:$0xf0] }
  0x55   :  { %964 = vmatmul.bf16.vlgmr.msrb.gmra.mxu2 %v3036_v16  ;;  %v3237_v40 = vsel %vm231_vm2, %v244_v23, %v245_v57 }
  0x63   :  { %886 = vmatmul.bf16.gmra.mxu0 %v3027_v12  ;;  %1018 = vmatmul.bf16.gmra.mxu3 %v3087_v28 }
  0x64   :  { %935 = vmatmul.bf16.gmra.mxu1 %v3090_v31 }
  0x65   :  { %969 = vmatmul.bf16.gmra.mxu2 %v3093_v34 }
  0x73   :  { %1062 = vmatmul.bf16.vlgmr.msrb.gmra.mxu0 %v3135_v62  ;;  %1023 = vmatmul.bf16.gmra.mxu3 %v3138_v45 }
  0x74   :  { %1111 = vmatmul.bf16.vlgmr.msrb.gmra.mxu1 %v2630_v36  ;;  %v2377_v36 = vld [vmem:[%s3754_s1 + $0xc4] sm:$0xf] }
  0x75   :  { %974 = vmatmul.bf16.gmra.mxu2 %v3141_v32  ;;  %v2032_v22 = vor.u32 %v2377_v36, %v2029_v8  ;;  %v2160_v36 = vor.u32 %v2409_v46, %v2157_v7  ;;  %v2221_v8 = vld [vmem:[%s3754_s1 + $0x248] sm:$0xf0]  ;;  %v2407_v46 = vld [vmem:[%s3754_s1 + $0x1b4] sm:$0xf]  ;;  %v2149_v7 = vld [vmem:[%s3754_s1 + $0x1b8] sm:$0xf0] }
  0x76   :  { %v2224_v59 = vor.u32 %v2425_v55, %v2221_v8  ;;  %v2423_v55 = vld [vmem:[%s3754_s1 + $0x234] sm:$0xf]  ;;  %v2213_v8 = vld [vmem:[%s3754_s1 + $0x238] sm:$0xf0] }
  0x77   :  { %1155 = vmatpush.bf16.msra.mxu2 %v2032_v22  ;;  %1253 = vmatpush.bf16.msra.mxu0 %v2160_v36  ;;  %v302_v22 = vrot.slane %v178_v19, 2  ;;  %v2024_v19 = vor.u32 %v2375_v41, %v2021_v2  ;;  %v2152_v36 = vor.u32 %v2407_v46, %v2149_v7  ;;  %v2013_v41 = vld [vmem:[%s3754_s1 + $0xa8] sm:$0xf0]  ;;  %v355_v2 = vrot.slane %v2965_v9, 2  ;;  %v2405_v46 = vld [vmem:[%s3754_s1 + $0x1a4] sm:$0xf] }
  0x78   :  { %1302 = vmatpush.bf16.msra.mxu1 %v2224_v59  ;;  %v2216_v59 = vor.u32 %v2423_v55, %v2213_v8  ;;  %v2141_v7 = vld [vmem:[%s3754_s1 + $0x1a8] sm:$0xf0]  ;;  %v2421_v55 = vld [vmem:[%s3754_s1 + $0x224] sm:$0xf] }
  0x79   :  { %v2205_v8 = vld [vmem:[%s3754_s1 + $0x228] sm:$0xf0] }
  0x7b   :  { %1156 = vmatpush.bf16.msra.mxu2 %v2024_v19  ;;  %1254 = vmatpush.bf16.msra.mxu0 %v2152_v36  ;;  %v2144_v36 = vor.u32 %v2405_v46, %v2141_v7  ;;  %v2369_v46 = vld [vmem:[%s3754_s1 + $0x84] sm:$0xf]  ;;  %v1997_v7 = vld [vmem:[%s3754_s1 + $0x88] sm:$0xf0] }
  0x7c   :  { %1303 = vmatpush.bf16.msra.mxu1 %v2216_v59 }
  0x7f   :  { %1255 = vmatpush.bf16.msra.mxu0 %v2144_v36 }
  0x83   :  { %1067 = vmatmul.bf16.gmra.mxu0 %v3183_v6  ;;  %1028 = vmatmul.bf16.gmra.mxu3 %v3186_v13 }
  0x84   :  { %1116 = vmatmul.bf16.gmra.mxu1 %v2728_v20  ;;  %v301_v20 = vrot.slane %v176_v47, 1  ;;  %v2391_v47 = vld [vmem:[%s3754_s1 + $0x134] sm:$0xf] }
  0x85   :  { %979 = vmatmul.bf16.gmra.mxu2 %v3189_v58  ;;  %v2088_v54 = vor.u32 %v2391_v47, %v2085_v17  ;;  %v356_v47 = vrot.slane %v2988_v18, 2 }
  0x86   :  { %v303_v52 = vor.u32 %v302_v22, %v301_v20  ;;  %v311_v20 = vrot.slane %v190_v49, 2  ;;  %v315_v22 = vrot.slane %v313_v1, 1  ;;  %v2016_v49 = vor.u32 %v2373_v0, %v2013_v41 }
  0x87   :  { %1205 = vmatpush.bf16.msra.mxu3 %v2088_v54  ;;  %v3279_v54 = vsel %vm345_vm3, %v355_v2, %v356_v47  ;;  %v320_v0 = vrot.slane %v202_v43, 2  ;;  %v324_v41 = vrot.slane %v322_v38, 1  ;;  %v2387_v43 = vld [vmem:[%s3754_s1 + $0x114] sm:$0xf]  ;;  %v358_v47 = vrot.slane %v3027_v12, 2 }
  0x88   :  { %v3234_v35 = vsel %vm264_vm1, %v303_v52, %v308_v53  ;;  %v317_v19 = vor.u32 %v316_v27, %v315_v22  ;;  %v248_v52 = vrot.slane %v2652_v48, 1  ;;  %1157 = vmatpush.bf16.msra.mxu2 %v2016_v49 }
  0x8a   :  { %v3285_v1 = vsel %vm231_vm2, %v247_v50, %v248_v52 }
  0x93   :  { %1072 = vmatmul.bf16.gmra.mxu0 %v3231_v60  ;;  %1033 = vmatmul.bf16.gmra.mxu3 %v3234_v35 }
  0x94   :  { %1121 = vmatmul.bf16.gmra.mxu1 %v2860_v37  ;;  %v310_v37 = vrot.slane %v188_v56, 1  ;;  %v2389_v56 = vld [vmem:[%s3754_s1 + $0x124] sm:$0xf] }
  0x95   :  { %984 = vmatmul.bf16.gmra.mxu2 %v3237_v40  ;;  %v2080_v17 = vor.u32 %v2389_v56, %v2077_v61  ;;  %v325_v56 = vrot.slane %v207_v3, 2  ;;  %v2371_v61 = vld [vmem:[%s3754_s1 + $0x94] sm:$0xf]  ;;  %v2069_v3 = vld [vmem:[%s3754_s1 + $0x118] sm:$0xf0] }
  0x96   :  { %v312_v21 = vor.u32 %v311_v20, %v310_v37  ;;  %v2208_v37 = vor.u32 %v2421_v55, %v2205_v8  ;;  %v319_v20 = vrot.slane %v200_v4, 1  ;;  %v2005_v4 = vld [vmem:[%s3754_s1 + $0x98] sm:$0xf0]  ;;  %v2072_v52 = vor.u32 %v2387_v43, %v2069_v3  ;;  %v2419_v43 = vld [vmem:[%s3754_s1 + $0x214] sm:$0xf] }
  0x97   :  { %1206 = vmatpush.bf16.msra.mxu3 %v2080_v17  ;;  %v326_v50 = vor.u32 %v325_v56, %v324_v41 }
  0x98   :  { %v3282_v23 = vsel %vm264_vm1, %v312_v21, %v317_v19  ;;  %1304 = vmatpush.bf16.msra.mxu1 %v2208_v37  ;;  %v2008_v21 = vor.u32 %v2371_v61, %v2005_v4  ;;  %v359_v19 = vrot.slane %v3053_v30, 2  ;;  %v321_v17 = vor.u32 %v320_v0, %v319_v20  ;;  %v2061_v20 = vld [vmem:[%s3754_s1 + $0x108] sm:$0xf0]  ;;  %v2403_v61 = vld [vmem:[%s3754_s1 + $0x194] sm:$0xf] }
  0x99   :  { %v2000_v30 = vor.u32 %v2369_v46, %v1997_v7  ;;  %v2133_v4 = vld [vmem:[%s3754_s1 + $0x198] sm:$0xf0] }
  0x9a   :  { %1158 = vmatpush.bf16.msra.mxu2 %v2008_v21  ;;  %v3344_v37 = vsel %vm264_vm1, %v321_v17, %v326_v50  ;;  %v2197_v21 = vld [vmem:[%s3754_s1 + $0x218] sm:$0xf0]  ;;  %v328_v17 = vrot.slane %v212_v29, 1 }
  0x9b   :  { %1207 = vmatpush.bf16.msra.mxu3 %v2072_v52 }
  0x9e   :  { %1159 = vmatpush.bf16.msra.mxu2 %v2000_v30  ;;  %v362_v30 = vrot.slane %v2652_v48, 2 }
  0xa0   :  { %v867_v53 = vpop.f32.mrf.mxu0 }
  0xa1   :  { %v916_v57 = vpop.f32.mrf.mxu1 }
  0xa2   :  { %v3287_v18 = vadd.f32 %v916_v57, %v867_v53  ;;  %v250_v53 = vrot.slane %v2739_v26, 1  ;;  %v251_v57 = vrot.slane %v2772_v42, 1 }
  0xa3   :  { %1077 = vmatmul.bf16.gmra.mxu0 %v3279_v54  ;;  %1038 = vmatmul.bf16.gmra.mxu3 %v3282_v23 }
  0xa4   :  { %1126 = vmatmul.bf16.gmra.mxu1 %v2965_v9  ;;  %v3353_v0 = vsel %vm231_vm2, %v250_v53, %v251_v57  ;;  %v329_v53 = vrot.slane %v214_v63, 2  ;;  %v254_v63 = vrot.slane %v2893_v5, 1 }
  0xa5   :  { %989 = vmatmul.bf16.gmra.mxu2 %v3285_v1 }
  0xa6   :  { %v892_v59 = vpop.f32.mrf.mxu3 }
  0xa8   :  { %v941_v9 = vpop.f32.mrf.mxu2  ;;  %v869_v22 = vpop.f32.mrf.mxu0 }
  0xa9   :  { %v3308_v27 = vadd.f32 %v941_v9, %v892_v59  ;;  %v918_v2 = vpop.f32.mrf.mxu1  ;;  %v3341_v59 = vsel %vm345_vm3, %v358_v47, %v359_v19  ;;  %v2385_v9 = vld [vmem:[%s3754_s1 + $0x104] sm:$0xf]  ;;  %v2136_v47 = vor.u32 %v2403_v61, %v2133_v4 }
  0xaa   :  { %v3314_v49 = vadd.f32 %v918_v2, %v869_v22  ;;  %v2064_v41 = vor.u32 %v2385_v9, %v2061_v20  ;;  %v331_v2 = vshrl.u32 %v2893_v5, 16  ;;  %v253_v20 = vrot.slane %v2865_v39, 1 }
  0xab   :  { %1256 = vmatpush.bf16.msra.mxu0 %v2136_v47 }
  0xac   :  { %1208 = vmatpush.bf16.msra.mxu3 %v2064_v41  ;;  %v333_v57 = vrot.slane %v331_v2, 1  ;;  %v3399_v48 = vsel %vm231_vm2, %v253_v20, %v254_v63 }
  0xae   :  { %v894_v38 = vpop.f32.mrf.mxu3 }
  0xb0   :  { %v943_v55 = vpop.f32.mrf.mxu2  ;;  %v872_v36 = vpop.f32.mrf.mxu0 }
  0xb1   :  { %v3338_v8 = vadd.f32 %v943_v55, %v894_v38  ;;  %v921_v22 = vpop.f32.mrf.mxu1  ;;  %v334_v38 = vrot.slane %v219_v33, 2  ;;  %v2476_v55 = vld [vmem:[%s3753_s0 + $0x50] sm:$0xff] }
  0xb2   :  { %v3355_v56 = vadd.f32 %v921_v22, %v872_v36  ;;  %v361_v29 = vrot.slane %v2476_v55, 2  ;;  %v330_v36 = vor.u32 %v329_v53, %v328_v17  ;;  %v2189_v17 = vld [vmem:[%s3754_s1 + $0x208] sm:$0xf0] }
  0xb3   :  { %1082 = vmatmul.bf16.gmra.mxu0 %v3341_v59  ;;  %1043 = vmatmul.bf16.gmra.mxu3 %v3344_v37  ;;  %v335_v9 = vor.u32 %v334_v38, %v333_v57 }
  0xb4   :  { %1131 = vmatmul.bf16.gmra.mxu1 %v3027_v12  ;;  %v2200_v12 = vor.u32 %v2419_v43, %v2197_v21  ;;  %v3393_v61 = vsel %vm345_vm3, %v361_v29, %v362_v30  ;;  %v2401_v21 = vld [vmem:[%s3754_s1 + $0x184] sm:$0xf]  ;;  %v364_v30 = vrot.slane %v2739_v26, 2 }
  0xb5   :  { %994 = vmatmul.bf16.gmra.mxu2 %v3353_v0  ;;  %v3396_v4 = vsel %vm264_vm1, %v330_v36, %v335_v9  ;;  %v365_v36 = vrot.slane %v2772_v42, 2 }
  0xb6   :  { %v897_v3 = vpop.f32.mrf.mxu3  ;;  %1305 = vmatpush.bf16.msra.mxu1 %v2200_v12  ;;  %v2417_v12 = vld [vmem:[%s3754_s1 + $0x204] sm:$0xf] }
  0xb7   :  { %v2192_v53 = vor.u32 %v2417_v12, %v2189_v17 }
  0xb8   :  { %v946_v19 = vpop.f32.mrf.mxu2  ;;  %v874_v50 = vpop.f32.mrf.mxu0 }
  0xb9   :  { %v3376_v52 = vadd.f32 %v946_v19, %v897_v3  ;;  %v923_v46 = vpop.f32.mrf.mxu1  ;;  %v2125_v3 = vld [vmem:[%s3754_s1 + $0x188] sm:$0xf0] }
  0xba   :  { %v3382_v7 = vadd.f32 %v923_v46, %v874_v50  ;;  %v2128_v19 = vor.u32 %v2401_v21, %v2125_v3  ;;  %1306 = vmatpush.bf16.msra.mxu1 %v2192_v53  ;;  %v367_v53 = vrot.slane %v2865_v39, 2 }
  0xbc   :  { %1257 = vmatpush.bf16.msra.mxu0 %v2128_v19 }
  0xbe   :  { %v899_v22 = vpop.f32.mrf.mxu3 }
  0xc0   :  { %v948_v41 = vpop.f32.mrf.mxu2  ;;  %v877_v33 = vpop.f32.mrf.mxu0 }
  0xc1   :  { %v3390_v2 = vadd.f32 %v948_v41, %v899_v22  ;;  %v926_v43 = vpop.f32.mrf.mxu1  ;;  %v3427_v41 = vsel %vm345_vm3, %v364_v30, %v365_v36 }
  0xc2   :  { %v3401_v47 = vadd.f32 %v926_v43, %v877_v33 }
  0xc3   :  { %1087 = vmatmul.bf16.gmra.mxu0 %v3393_v61  ;;  %1048 = vmatmul.bf16.gmra.mxu3 %v3396_v4 }
  0xc4   :  { %1136 = vmatmul.bf16.gmra.mxu1 %v2476_v55 }
  0xc5   :  { %999 = vmatmul.bf16.gmra.mxu2 %v3399_v48 }
  0xc6   :  { %v902_v50 = vpop.f32.mrf.mxu3 }
  0xc8   :  { %v951_v57 = vpop.f32.mrf.mxu2  ;;  %v879_v38 = vpop.f32.mrf.mxu0 }
  0xc9   :  { %v3418_v46 = vadd.f32 %v951_v57, %v902_v50  ;;  %v928_v55 = vpop.f32.mrf.mxu1  ;;  %v368_v57 = vrot.slane %v2893_v5, 2 }
  0xca   :  { %v3420_v29 = vadd.f32 %v928_v55, %v879_v38 }
  0xce   :  { %v904_v9 = vpop.f32.mrf.mxu3 }
  0xd0   :  { %v953_v20 = vpop.f32.mrf.mxu2  ;;  %v882_v63 = vpop.f32.mrf.mxu0 }
  0xd1   :  { %v3424_v22 = vadd.f32 %v953_v20, %v904_v9  ;;  %v931_v33 = vpop.f32.mrf.mxu1 }
  0xd2   :  { %v3429_v43 = vadd.f32 %v931_v33, %v882_v63 }
  0xd3   :  { %1092 = vmatmul.bf16.gmra.mxu0 %v3427_v41  ;;  %1209 = vmatmul.bf16.vlgmr.msra.gmra.mxu3 %v3036_v16 }
  0xd4   :  { %1141 = vmatmul.bf16.gmra.mxu1 %v2739_v26 }
  0xd5   :  { %1160 = vmatmul.bf16.vlgmr.msra.gmra.mxu2 %v2731_v24  ;;  %v3442_v24 = vsel %vm345_vm3, %v367_v53, %v368_v57 }
  0xd6   :  { %v1014_v42 = vpop.f32.mrf.mxu3 }
  0xd8   :  { %v965_v21 = vpop.f32.mrf.mxu2  ;;  %v884_v12 = vpop.f32.mrf.mxu0 }
  0xd9   :  { %v966_v3 = vadd.f32 %v965_v21, %v3287_v18  ;;  %v933_v19 = vpop.f32.mrf.mxu1 }
  0xda   :  { %v3436_v17 = vadd.f32 %v933_v19, %v884_v12 }
  0xdb   :  { %v1015_v50 = vadd.f32 %v1014_v42, %v966_v3 }
  0xde   :  { %v1016_v38 = vpop.f32.mrf.mxu3 }
  0xe0   :  { %v967_v55 = vpop.f32.mrf.mxu2  ;;  %v887_v26 = vpop.f32.mrf.mxu0 }
  0xe1   :  { %v968_v16 = vadd.f32 %v967_v55, %v3314_v49  ;;  %v936_v30 = vpop.f32.mrf.mxu1 }
  0xe2   :  { %v3444_v36 = vadd.f32 %v936_v30, %v887_v26 }
  0xe3   :  { %v1017_v18 = vadd.f32 %v1016_v38, %v968_v16  ;;  %1097 = vmatmul.bf16.gmra.mxu0 %v3442_v24  ;;  %1214 = vmatmul.bf16.gmra.mxu3 %v3093_v34 }
  0xe4   :  { %1146 = vmatmul.bf16.gmra.mxu1 %v2865_v39  ;;  %v3457_v39 = vld [vmem:[%s3755_s2] sm:$0x3] }
  0xe5   :  { %1165 = vmatmul.bf16.gmra.mxu2 %v2868_v44 }
  0xe6   :  { %v1019_v5 = vpop.f32.mrf.mxu3 }
  0xe8   :  { %v970_v9 = vpop.f32.mrf.mxu2  ;;  %v889_v20 = vpop.f32.mrf.mxu0 }
  0xe9   :  { %v971_v49 = vadd.f32 %v970_v9, %v3355_v56  ;;  %v938_v63 = vpop.f32.mrf.mxu1  ;;  %v3462_v56 = vperm.slane %v3457_v39, 0 }
  0xea   :  { %v3451_v33 = vadd.f32 %v938_v63, %v889_v20 }
  0xeb   :  { %v1020_v42 = vadd.f32 %v1019_v5, %v971_v49 }
  0xee   :  { %v1021_v21 = vpop.f32.mrf.mxu3 }
  0xf0   :  { %v972_v3 = vpop.f32.mrf.mxu2  ;;  %v1063_v19 = vpop.f32.mrf.mxu0 }
  0xf1   :  { %v973_v12 = vadd.f32 %v972_v3, %v3382_v7  ;;  %v1064_v44 = vadd.f32 %v1063_v19, %v1015_v50  ;;  %v3459_v34 = vpop.f32.mrf.mxu1 }
  0xf3   :  { %v1022_v53 = vadd.f32 %v1021_v21, %v973_v12  ;;  %1258 = vmatmul.bf16.vlgmr.msra.gmra.mxu0 %v3030_v14  ;;  %1219 = vmatmul.bf16.gmra.mxu3 %v3141_v32  ;;  %v1354_v57 = vadd.f32 %v3462_v56, %v1064_v44 }
  0xf4   :  { %1307 = vmatmul.bf16.vlgmr.msra.gmra.mxu1 %v3135_v62  ;;  %v3481_v62 = vld [vmem:[%s3756_s3 + $0x10] sm:$0xff] }
  0xf5   :  { %1170 = vmatmul.bf16.gmra.mxu2 %v2968_v10  ;;  %v1386_v5 = vmax.f32 %v1354_v57, 0.0  ;;  %v3476_v10 = vld [vmem:[%s3756_s3] sm:$0xff] }
  0xf6   :  { %v1024_v7 = vpop.f32.mrf.mxu3 }
  0xf8   :  { %v975_v38 = vpop.f32.mrf.mxu2  ;;  %v1065_v55 = vpop.f32.mrf.mxu0 }
  0xf9   :  { %v976_v50 = vadd.f32 %v975_v38, %v3401_v47  ;;  %v1066_v16 = vadd.f32 %v1065_v55, %v1017_v18  ;;  %v3470_v26 = vpop.f32.mrf.mxu1  ;;  %v1422_v18 = vmul.f32 %v3476_v10, %v1386_v5 }
  0xfb   :  { %v1025_v30 = vadd.f32 %v1024_v7, %v976_v50  ;;  %v1356_v14 = vadd.f32 %v3462_v56, %v1066_v16 }
  0xfd   :  { %v1388_v32 = vmax.f32 %v1356_v14, 0.0 }
  0xfe   :  { %v1026_v47 = vpop.f32.mrf.mxu3 }
  0xff   :  { %v1424_v9 = vmul.f32 %v3481_v62, %v1388_v32 }
 0x100   :  { %v977_v49 = vpop.f32.mrf.mxu2  ;;  %v1068_v63 = vpop.f32.mrf.mxu0 }
 0x101   :  { %v978_v20 = vadd.f32 %v977_v49, %v3420_v29  ;;  %v1454_v21 = vmax.f32 %v1422_v18, %v1424_v9  ;;  %v1069_v3 = vadd.f32 %v1068_v63, %v1020_v42  ;;  %v3486_v12 = vpop.f32.mrf.mxu1 }
 0x103   :  { %v1027_v19 = vadd.f32 %v1026_v47, %v978_v20  ;;  %1263 = vmatmul.bf16.gmra.mxu0 %v3087_v28  ;;  %1224 = vmatmul.bf16.gmra.mxu3 %v3189_v58  ;;  %v1455_v44 = vrot.slane %v1454_v21, 4  ;;  %v1358_v57 = vadd.f32 %v3462_v56, %v1069_v3 }
 0x104   :  { %1312 = vmatmul.bf16.gmra.mxu1 %v3183_v6 }
 0x105   :  { %1175 = vmatmul.bf16.gmra.mxu2 %v3033_v15  ;;  %v1456_v42 = vmax.f32 %v1454_v21, %v1455_v44  ;;  %v1390_v28 = vmax.f32 %v1358_v57, 0.0 }
 0x106   :  { %v1029_v7 = vpop.f32.mrf.mxu3 }
 0x107   :  { %v1457_v14 = vrot.slane %v1456_v42, 2  ;;  %v1426_v6 = vmul.f32 %v3476_v10, %v1390_v28 }
 0x108   :  { %v980_v38 = vpop.f32.mrf.mxu2  ;;  %v1070_v50 = vpop.f32.mrf.mxu0 }
 0x109   :  { %v981_v29 = vadd.f32 %v980_v38, %v3429_v43  ;;  %v1071_v55 = vadd.f32 %v1070_v50, %v1022_v53  ;;  %v3494_v16 = vpop.f32.mrf.mxu1  ;;  %v1458_v49 = vmax.f32 %v1456_v42, %v1457_v14 }
 0x10b   :  { %v1030_v5 = vadd.f32 %v1029_v7, %v981_v29  ;;  %v1360_v58 = vadd.f32 %v3462_v56, %v1071_v55  ;;  %v1459_v21 = vrot.slane %v1458_v49, 1 }
 0x10d   :  { %v1392_v15 = vmax.f32 %v1360_v58, 0.0 }
 0x10e   :  { %v1031_v32 = vpop.f32.mrf.mxu3 }
 0x10f   :  { %v1428_v47 = vmul.f32 %v3481_v62, %v1392_v15 }
 0x110   :  { %v982_v18 = vpop.f32.mrf.mxu2  ;;  %v1073_v9 = vpop.f32.mrf.mxu0 }
 0x111   :  { %v1468_v43 = vmax.f32 %v1426_v6, %v1428_v47  ;;  %v1074_v20 = vadd.f32 %v1073_v9, %v1025_v30  ;;  %v3499_v63 = vpop.f32.mrf.mxu1  ;;  %v1460_v30 = vmax.f32 %v1458_v49, %v1459_v21 }
 0x113   :  { %v1469_v53 = vrot.slane %v1468_v43, 4  ;;  %1268 = vmatmul.bf16.gmra.mxu0 %v3138_v45  ;;  %1229 = vmatmul.bf16.gmra.mxu3 %v3237_v40  ;;  %v1362_v57 = vadd.f32 %v3462_v56, %v1074_v20 }
 0x114   :  { %1317 = vmatmul.bf16.gmra.mxu1 %v3231_v60 }
 0x115   :  { %1180 = vmatmul.bf16.gmra.mxu2 %v3090_v31  ;;  %v1470_v3 = vmax.f32 %v1468_v43, %v1469_v53  ;;  %v1394_v28 = vmax.f32 %v1362_v57, 0.0  ;;  %v1566_v31 = vpack.c.bf16 %v1460_v30, %v1460_v30 }
 0x116   :  { %v1034_v44 = vpop.f32.mrf.mxu3 }
 0x117   :  { %v1471_v7 = vrot.slane %v1470_v3, 2  ;;  %v1430_v6 = vmul.f32 %v3476_v10, %v1394_v28  ;;  %v1634_v43 = vunpack.c.l.b16 %v1566_v31 }
 0x118   :  { %v985_v38 = vpop.f32.mrf.mxu2  ;;  %v1075_v29 = vpop.f32.mrf.mxu0 }
 0x119   :  { %v1472_v50 = vmax.f32 %v1470_v3, %v1471_v7  ;;  %v1076_v42 = vadd.f32 %v1075_v29, %v1027_v19  ;;  %v3506_v55 = vpop.f32.mrf.mxu1  ;;  %v983_v7 = vadd.f32 %v982_v18, %v3436_v17 }
 0x11b   :  { %v1473_v45 = vrot.slane %v1472_v50, 1  ;;  %v1364_v40 = vadd.f32 %v3462_v56, %v1076_v42 }
 0x11d   :  { %v1474_v58 = vmax.f32 %v1472_v50, %v1473_v45  ;;  %v1396_v60 = vmax.f32 %v1364_v40, 0.0  ;;  %v1032_v50 = vadd.f32 %v1031_v32, %v983_v7 }
 0x11e   :  { %v1036_v14 = vpop.f32.mrf.mxu3 }
 0x11f   :  { %v1568_v15 = vpack.c.bf16 %v1474_v58, %v1474_v58  ;;  %v1432_v47 = vmul.f32 %v3481_v62, %v1396_v60 }
 0x120   :  { %v987_v9 = vpop.f32.mrf.mxu2  ;;  %v1078_v49 = vpop.f32.mrf.mxu0 }
 0x121   :  { %v1636_v19 = vunpack.c.l.b16 %v1568_v15  ;;  %v1482_v20 = vmax.f32 %v1430_v6, %v1432_v47  ;;  %v1079_v53 = vadd.f32 %v1078_v49, %v1030_v5  ;;  %v3511_v21 = vpop.f32.mrf.mxu1 }
 0x123   :  { %v1651_v3 = vsel %vm1650_vm4, %v1636_v19, %v1634_v43  ;;  %v1483_v57 = vrot.slane %v1482_v20, 4  ;;  %1273 = vmatmul.bf16.gmra.mxu0 %v3186_v13  ;;  %1234 = vmatmul.bf16.gmra.mxu3 %v3285_v1  ;;  %v1366_v5 = vadd.f32 %v3462_v56, %v1079_v53 }
 0x124   :  { %1322 = vmatmul.bf16.gmra.mxu1 %v3279_v54 }
 0x125   :  { %1185 = vmatmul.bf16.gmra.mxu2 %v2734_v25  ;;  %v1484_v29 = vmax.f32 %v1482_v20, %v1483_v57  ;;  %v1398_v13 = vmax.f32 %v1366_v5, 0.0  ;;  %v986_v25 = vadd.f32 %v985_v38, %v3444_v36  ;;  %v988_v36 = vadd.f32 %v987_v9, %v3451_v33 }
 0x126   :  { %v1039_v30 = vpop.f32.mrf.mxu3 }
 0x127   :  { %v1485_v42 = vrot.slane %v1484_v29, 2  ;;  %v1434_v32 = vmul.f32 %v3476_v10, %v1398_v13  ;;  %v1035_v43 = vadd.f32 %v1034_v44, %v986_v25 }
 0x128   :  { %v990_v45 = vpop.f32.mrf.mxu2  ;;  %v1080_v28 = vpop.f32.mrf.mxu0 }
 0x129   :  { %v1486_v40 = vmax.f32 %v1484_v29, %v1485_v42  ;;  %v1081_v31 = vadd.f32 %v1080_v28, %v1032_v50  ;;  %v3520_v17 = vpop.f32.mrf.mxu1  ;;  %v1037_v50 = vadd.f32 %v1036_v14, %v988_v36  ;;  %v2440_v36 = vld [vmem:[%s3757_s4 + $0x38] sm:$0xff] }
 0x12a   :  { %1771 = vmatpush.bf16.msrb.mxu2 %v2440_v36 }
 0x12b   :  { %v1487_v18 = vrot.slane %v1486_v40, 1  ;;  %v1368_v1 = vadd.f32 %v3462_v56, %v1081_v31 }
 0x12d   :  { %v1488_v58 = vmax.f32 %v1486_v40, %v1487_v18  ;;  %v1400_v54 = vmax.f32 %v1368_v1, 0.0 }
 0x12e   :  { %v1041_v60 = vpop.f32.mrf.mxu3 }
 0x12f   :  { %v1570_v15 = vpack.c.bf16 %v1488_v58, %v1488_v58  ;;  %v1436_v6 = vmul.f32 %v3481_v62, %v1400_v54 }
 0x130   :  { %v992_v47 = vpop.f32.mrf.mxu2  ;;  %v1083_v49 = vpop.f32.mrf.mxu0 }
 0x131   :  { %v1638_v19 = vunpack.c.l.b16 %v1570_v15  ;;  %v1496_v20 = vmax.f32 %v1434_v32, %v1436_v6  ;;  %v3526_v53 = vpop.f32.mrf.mxu1  ;;  %v1084_v57 = vadd.f32 %v1083_v49, %v1035_v43 }
 0x133   :  { %v1653_v7 = vsel %vm1652_vm5, %v1638_v19, %v1651_v3  ;;  %v1497_v38 = vrot.slane %v1496_v20, 4  ;;  %1278 = vmatmul.bf16.gmra.mxu0 %v3234_v35  ;;  %1239 = vmatmul.bf16.gmra.mxu3 %v3353_v0  ;;  %v1370_v5 = vadd.f32 %v3462_v56, %v1084_v57 }
 0x134   :  { %1327 = vmatmul.bf16.gmra.mxu1 %v3341_v59 }
 0x135   :  { %1190 = vmatmul.bf16.gmra.mxu2 %v2871_v51  ;;  %v1498_v29 = vmax.f32 %v1496_v20, %v1497_v38  ;;  %v1402_v31 = vmax.f32 %v1370_v5, 0.0  ;;  %v991_v51 = vadd.f32 %v990_v45, %v3308_v27  ;;  %v993_v27 = vadd.f32 %v992_v47, %v3338_v8 }
 0x136   :  { %v3534_v44 = vpop.f32.mrf.mxu3 }
 0x137   :  { %v1499_v42 = vrot.slane %v1498_v29, 2  ;;  %v1438_v1 = vmul.f32 %v3476_v10, %v1402_v31  ;;  %v1040_v15 = vadd.f32 %v1039_v30, %v991_v51 }
 0x138   :  { %v995_v3 = vpop.f32.mrf.mxu2  ;;  %v1085_v28 = vpop.f32.mrf.mxu0 }
 0x139   :  { %v1500_v33 = vmax.f32 %v1498_v29, %v1499_v42  ;;  %v1086_v9 = vadd.f32 %v1085_v28, %v1037_v50  ;;  %v3537_v40 = vpop.f32.mrf.mxu1 }
 0x13b   :  { %v1501_v35 = vrot.slane %v1500_v33, 1  ;;  %v1372_v0 = vadd.f32 %v3462_v56, %v1086_v9  ;;  %v2438_v9 = vld [vmem:[%s3757_s4 + $0x28] sm:$0xff] }
 0x13d   :  { %v1502_v59 = vmax.f32 %v1500_v33, %v1501_v35  ;;  %v1404_v18 = vmax.f32 %v1372_v0, 0.0 }
 0x13e   :  { %v3541_v13 = vpop.f32.mrf.mxu3 }
 0x13f   :  { %v1572_v14 = vpack.c.bf16 %v1502_v59, %v1502_v59  ;;  %v1440_v25 = vmul.f32 %v3481_v62, %v1404_v18 }
 0x140   :  { %v997_v58 = vpop.f32.mrf.mxu2  ;;  %v1088_v54 = vpop.f32.mrf.mxu0 }
 0x141   :  { %v1640_v32 = vunpack.c.l.b16 %v1572_v14  ;;  %v1510_v6 = vmax.f32 %v1438_v1, %v1440_v25  ;;  %v3545_v49 = vpop.f32.mrf.mxu1  ;;  %v1089_v19 = vadd.f32 %v1088_v54, %v1040_v15  ;;  %v2437_v1 = vld [vmem:[%s3757_s4 + $0x20] sm:$0xff]  ;;  %v998_v54 = vadd.f32 %v997_v58, %v3390_v2 }
 0x143   :  { %v1655_v43 = vsel %vm1654_vm6, %v1640_v32, %v1653_v7  ;;  %v1511_v45 = vrot.slane %v1510_v6, 4  ;;  %1283 = vmatmul.bf16.gmra.mxu0 %v3282_v23  ;;  %1244 = vmatmul.bf16.gmra.mxu3 %v3399_v48  ;;  %v1042_v7 = vadd.f32 %v1041_v60, %v993_v27  ;;  %v1374_v8 = vadd.f32 %v3462_v56, %v1089_v19  ;;  %v2436_v27 = vld [vmem:[%s3757_s4 + $0x18] sm:$0xff] }
 0x144   :  { %1332 = vmatmul.bf16.gmra.mxu1 %v3393_v61  ;;  %v996_v60 = vadd.f32 %v995_v3, %v3376_v52 }
 0x145   :  { %1195 = vmatmul.bf16.gmra.mxu2 %v2971_v11  ;;  %v1512_v20 = vmax.f32 %v1510_v6, %v1511_v45  ;;  %v2439_v11 = vld [vmem:[%s3757_s4 + $0x30] sm:$0xff]  ;;  %v1406_v50 = vmax.f32 %v1374_v8, 0.0  ;;  %v1047_v45 = vadd.f32 %v3541_v13, %v998_v54 }
 0x146   :  { %v3553_v30 = vpop.f32.mrf.mxu3  ;;  %1772 = vmatpush.bf16.msrb.mxu2 %v2439_v11  ;;  %v1045_v18 = vadd.f32 %v3534_v44, %v996_v60 }
 0x147   :  { %v1513_v38 = vrot.slane %v1512_v20, 2  ;;  %v1442_v31 = vmul.f32 %v3476_v10, %v1406_v50 }
 0x148   :  { %v1000_v47 = vpop.f32.mrf.mxu2  ;;  %v1090_v57 = vpop.f32.mrf.mxu0 }
 0x149   :  { %v1514_v23 = vmax.f32 %v1512_v20, %v1513_v38  ;;  %v1091_v48 = vadd.f32 %v1090_v57, %v1042_v7  ;;  %v3559_v29 = vpop.f32.mrf.mxu1  ;;  %v2435_v38 = vld [vmem:[%s3757_s4 + $0x10] sm:$0xff] }
 0x14a   :  { %1773 = vmatpush.bf16.msrb.mxu2 %v2438_v9 }
 0x14b   :  { %v1515_v61 = vrot.slane %v1514_v23, 1  ;;  %v1376_v42 = vadd.f32 %v3462_v56, %v1091_v48 }
 0x14d   :  { %v1516_v5 = vmax.f32 %v1514_v23, %v1515_v61  ;;  %v1408_v28 = vmax.f32 %v1376_v42, 0.0  ;;  %v1001_v23 = vadd.f32 %v1000_v47, %v3418_v46  ;;  %v2434_v61 = vld [vmem:[%s3757_s4 + $0x8] sm:$0xff] }
 0x14e   :  { %v3566_v33 = vpop.f32.mrf.mxu3  ;;  %1774 = vmatpush.bf16.msrb.mxu2 %v2437_v1 }
 0x14f   :  { %v1574_v35 = vpack.c.bf16 %v1516_v5, %v1516_v5  ;;  %v1444_v0 = vmul.f32 %v3481_v62, %v1408_v28  ;;  %v1050_v46 = vadd.f32 %v3553_v30, %v1001_v23 }
 0x150   :  { %v1002_v51 = vpop.f32.mrf.mxu2  ;;  %v1093_v59 = vpop.f32.mrf.mxu0 }
 0x151   :  { %v1642_v52 = vunpack.c.l.b16 %v1574_v35  ;;  %v1524_v3 = vmax.f32 %v1442_v31, %v1444_v0  ;;  %v3574_v14 = vpop.f32.mrf.mxu1  ;;  %v1094_v32 = vadd.f32 %v1093_v59, %v1045_v18  ;;  %v2433_v59 = vld [vmem:[%s3757_s4] sm:$0xff]  ;;  %v1003_v18 = vadd.f32 %v1002_v51, %v3424_v22 }
 0x152   :  { %1775 = vmatpush.bf16.msrb.mxu2 %v2436_v27 }
 0x153   :  { %v1657_v25 = vsel %vm1656_vm7, %v1642_v52, %v1655_v43  ;;  %v1525_v15 = vrot.slane %v1524_v3, 4  ;;  %1288 = vmatmul.bf16.gmra.mxu0 %v3344_v37  ;;  %v1378_v43 = vadd.f32 %v3462_v56, %v1094_v32  ;;  %v1052_v54 = vadd.f32 %v3566_v33, %v1003_v18 }
 0x154   :  { %1337 = vmatmul.bf16.gmra.mxu1 %v3427_v41 }
 0x155   :  { %v1526_v44 = vmax.f32 %v1524_v3, %v1525_v15  ;;  %v1410_v57 = vmax.f32 %v1378_v43, 0.0 }
 0x156   :  { %v1210_v6 = vpop.f32.mrf.mxu3  ;;  %1776 = vmatpush.bf16.msrb.mxu2 %v2435_v38 }
 0x157   :  { %v1527_v19 = vrot.slane %v1526_v44, 2  ;;  %v1446_v42 = vmul.f32 %v3476_v10, %v1410_v57 }
 0x158   :  { %v1161_v20 = vpop.f32.mrf.mxu2  ;;  %v1095_v58 = vpop.f32.mrf.mxu0 }
 0x159   :  { %v1162_v2 = vadd.f32 %v1161_v20, %v3459_v34  ;;  %v1528_v37 = vmax.f32 %v1526_v44, %v1527_v19  ;;  %v1096_v36 = vadd.f32 %v1095_v58, %v1047_v45  ;;  %v3589_v41 = vpop.f32.mrf.mxu1 }
 0x15a   :  { %1777 = vmatpush.bf16.msrb.mxu2 %v2434_v61 }
 0x15b   :  { %v1211_v7 = vadd.f32 %v1210_v6, %v1162_v2  ;;  %v1529_v8 = vrot.slane %v1528_v37, 1  ;;  %v1380_v13 = vadd.f32 %v3462_v56, %v1096_v36 }
 0x15d   :  { %v1530_v48 = vmax.f32 %v1528_v37, %v1529_v8  ;;  %v1412_v34 = vmax.f32 %v1380_v13, 0.0 }
 0x15e   :  { %v1212_v11 = vpop.f32.mrf.mxu3  ;;  %1778 = vmatpush.bf16.msrb.mxu2 %v2433_v59 }
 0x15f   :  { %v1576_v50 = vpack.c.bf16 %v1530_v48, %v1530_v48  ;;  %v1448_v60 = vmul.f32 %v3481_v62, %v1412_v34 }
 0x160   :  { %v1163_v5 = vpop.f32.mrf.mxu2  ;;  %v1098_v9 = vpop.f32.mrf.mxu0 }
 0x161   :  { %v1164_v28 = vadd.f32 %v1163_v5, %v3470_v26  ;;  %v1644_v47 = vunpack.c.l.b16 %v1576_v50  ;;  %v1538_v35 = vmax.f32 %v1446_v42, %v1448_v60  ;;  %v3603_v31 = vpop.f32.mrf.mxu1  ;;  %v1099_v3 = vadd.f32 %v1098_v9, %v1050_v46 }
 0x162   :  { %v3623_v50 = vperm.slane %v3457_v39, 1  ;;  %v3631_v39 = vld [vmem:[%s3756_s3 + $0x8] sm:$0xff] }
 0x163   :  { %v1213_v0 = vadd.f32 %v1212_v11, %v1164_v28  ;;  %v1539_v52 = vrot.slane %v1538_v35, 4  ;;  %1293 = vmatmul.bf16.gmra.mxu0 %v3396_v4  ;;  %v1659_v26 = vsel %vm1658_vm8, %v1644_v47, %v1657_v25  ;;  %v1382_v32 = vadd.f32 %v3462_v56, %v1099_v3 }
 0x164   :  { %1342 = vmatmul.bf16.gmra.mxu1 %v3442_v24 }
 0x165   :  { %v1540_v30 = vmax.f32 %v1538_v35, %v1539_v52  ;;  %v1414_v19 = vmax.f32 %v1382_v32, 0.0 }
 0x166   :  { %v1215_v1 = vpop.f32.mrf.mxu3 }
 0x167   :  { %v1541_v15 = vrot.slane %v1540_v30, 2  ;;  %v1450_v58 = vmul.f32 %v3476_v10, %v1414_v19 }
 0x168   :  { %v1166_v44 = vpop.f32.mrf.mxu2  ;;  %v1100_v22 = vpop.f32.mrf.mxu0 }
 0x169   :  { %v1167_v6 = vadd.f32 %v1166_v44, %v3486_v12  ;;  %v1542_v51 = vmax.f32 %v1540_v30, %v1541_v15  ;;  %v1101_v27 = vadd.f32 %v1100_v22, %v1052_v54  ;;  %v3615_v45 = vpop.f32.mrf.mxu1 }
 0x16b   :  { %v1216_v4 = vadd.f32 %v1215_v1, %v1167_v6  ;;  %v1543_v25 = vrot.slane %v1542_v51, 1  ;;  %v1384_v24 = vadd.f32 %v3462_v56, %v1101_v27 }
 0x16d   :  { %v1544_v43 = vmax.f32 %v1542_v51, %v1543_v25  ;;  %v1416_v20 = vmax.f32 %v1384_v24, 0.0 }
 0x16e   :  { %v1217_v2 = vpop.f32.mrf.mxu3 }
 0x16f   :  { %v1578_v33 = vpack.c.bf16 %v1544_v43, %v1544_v43  ;;  %v1452_v37 = vmul.f32 %v3481_v62, %v1416_v20  ;;  %v2448_v43 = vld [vmem:[%s3757_s4 + $0x78] sm:$0xff] }
 0x170   :  { %v1168_v36 = vpop.f32.mrf.mxu2  ;;  %v1259_v38 = vpop.f32.mrf.mxu0  ;;  %1784 = vmatpush.bf16.msrb.mxu3 %v2448_v43 }
 0x171   :  { %v1169_v12 = vadd.f32 %v1168_v36, %v3494_v16  ;;  %v1646_v8 = vunpack.c.l.b16 %v1578_v33  ;;  %v1552_v57 = vmax.f32 %v1450_v58, %v1452_v37  ;;  %v1260_v13 = vadd.f32 %v1259_v38, %v1211_v7  ;;  %v1308_v23 = vpop.f32.mrf.mxu1 }
 0x173   :  { %v1218_v48 = vadd.f32 %v1217_v2, %v1169_v12  ;;  %v1553_v34 = vrot.slane %v1552_v57, 4  ;;  %v1309_v56 = vadd.f32 %v1308_v23, %v1260_v13  ;;  %v1661_v11 = vsel %vm1660_vm9, %v1646_v8, %v1659_v26 }
 0x175   :  { %v1554_v61 = vmax.f32 %v1552_v57, %v1553_v34  ;;  %v1355_v28 = vadd.f32 %v3623_v50, %v1309_v56 }
 0x176   :  { %v1220_v10 = vpop.f32.mrf.mxu3 }
 0x177   :  { %v1555_v62 = vrot.slane %v1554_v61, 2  ;;  %v1387_v18 = vmax.f32 %v1355_v28, 0.0  ;;  %v2447_v28 = vld [vmem:[%s3757_s4 + $0x70] sm:$0xff] }
 0x178   :  { %v1171_v42 = vpop.f32.mrf.mxu2  ;;  %v1261_v60 = vpop.f32.mrf.mxu0  ;;  %1785 = vmatpush.bf16.msrb.mxu3 %v2447_v28 }
 0x179   :  { %v1172_v16 = vadd.f32 %v1171_v42, %v3499_v63  ;;  %v1556_v5 = vmax.f32 %v1554_v61, %v1555_v62  ;;  %v1262_v7 = vadd.f32 %v1261_v60, %v1213_v0  ;;  %v1310_v9 = vpop.f32.mrf.mxu1  ;;  %v3636_v63 = vld [vmem:[%s3756_s3 + $0x18] sm:$0xff]  ;;  %v1423_v32 = vmul.f32 %v3631_v39, %v1387_v18 }
 0x17b   :  { %v1221_v46 = vadd.f32 %v1220_v10, %v1172_v16  ;;  %v1557_v47 = vrot.slane %v1556_v5, 1  ;;  %v1311_v35 = vadd.f32 %v1310_v9, %v1262_v7 }
 0x17d   :  { %v1558_v59 = vmax.f32 %v1556_v5, %v1557_v47  ;;  %v1357_v52 = vadd.f32 %v3623_v50, %v1311_v35 }
 0x17e   :  { %v1222_v3 = vpop.f32.mrf.mxu3 }
 0x17f   :  { %v1580_v0 = vpack.c.bf16 %v1558_v59, %v1558_v59  ;;  %v1389_v26 = vmax.f32 %v1357_v52, 0.0 }
 0x180   :  { %v1173_v30 = vpop.f32.mrf.mxu2  ;;  %v1264_v54 = vpop.f32.mrf.mxu0 }
 0x181   :  { %v1174_v1 = vadd.f32 %v1173_v30, %v3506_v55  ;;  %v1648_v15 = vunpack.c.l.b16 %v1580_v0  ;;  %v1425_v44 = vmul.f32 %v3636_v63, %v1389_v26  ;;  %v1265_v6 = vadd.f32 %v1264_v54, %v1216_v4  ;;  %v1313_v22 = vpop.f32.mrf.mxu1 }
 0x183   :  { %v1223_v51 = vadd.f32 %v1222_v3, %v1174_v1  ;;  %v1461_v27 = vmax.f32 %v1423_v32, %v1425_v44  ;;  %v1314_v25 = vadd.f32 %v1313_v22, %v1265_v6  ;;  %v1663_v19 = vsel %vm1662_vm10, %v1648_v15, %v1661_v11 }
 0x184   :  { %v1671_v24 = vpack.c.b16 %v1663_v19, %v1663_v19 }
 0x185   :  { %v1462_v55 = vrot.slane %v1461_v27, 4  ;;  %v1359_v4 = vadd.f32 %v3623_v50, %v1314_v25 }
 0x186   :  { %1779 = vmatmul.bf16.vlgmr.msrb.gmra.mxu2 %v1671_v24  ;;  %v1225_v2 = vpop.f32.mrf.mxu3 }
 0x187   :  { %v1463_v38 = vmax.f32 %v1461_v27, %v1462_v55  ;;  %v1391_v57 = vmax.f32 %v1359_v4, 0.0 }
 0x188   :  { %v1176_v20 = vpop.f32.mrf.mxu2  ;;  %v1266_v58 = vpop.f32.mrf.mxu0 }
 0x189   :  { %v1177_v33 = vadd.f32 %v1176_v20, %v3511_v21  ;;  %v1267_v37 = vadd.f32 %v1266_v58, %v1218_v48  ;;  %v1315_v36 = vpop.f32.mrf.mxu1  ;;  %v1464_v23 = vrot.slane %v1463_v38, 2  ;;  %v1427_v61 = vmul.f32 %v3631_v39, %v1391_v57 }
 0x18b   :  { %v1226_v12 = vadd.f32 %v1225_v2, %v1177_v33  ;;  %v1316_v8 = vadd.f32 %v1315_v36, %v1267_v37  ;;  %v1465_v42 = vmax.f32 %v1463_v38, %v1464_v23  ;;  %v2446_v36 = vld [vmem:[%s3757_s4 + $0x68] sm:$0xff] }
 0x18c   :  { %1786 = vmatpush.bf16.msrb.mxu3 %v2446_v36 }
 0x18d   :  { %v1361_v13 = vadd.f32 %v3623_v50, %v1316_v8  ;;  %v1466_v7 = vrot.slane %v1465_v42, 1 }
 0x18e   :  { %v1227_v60 = vpop.f32.mrf.mxu3 }
 0x18f   :  { %v1393_v34 = vmax.f32 %v1361_v13, 0.0  ;;  %v1467_v3 = vmax.f32 %v1465_v42, %v1466_v7 }
 0x190   :  { %v1178_v56 = vpop.f32.mrf.mxu2  ;;  %v1269_v11 = vpop.f32.mrf.mxu0 }
 0x191   :  { %v1429_v10 = vmul.f32 %v3636_v63, %v1393_v34  ;;  %v1270_v21 = vadd.f32 %v1269_v11, %v1221_v46  ;;  %v1318_v62 = vpop.f32.mrf.mxu1  ;;  %v1567_v32 = vpack.c.bf16 %v1467_v3, %v1467_v3  ;;  %v1179_v43 = vadd.f32 %v1178_v56, %v3520_v17 }
 0x193   :  { %v1475_v16 = vmax.f32 %v1427_v61, %v1429_v10  ;;  %v1319_v48 = vadd.f32 %v1318_v62, %v1270_v21  ;;  %v1635_v55 = vunpack.c.l.b16 %v1567_v32  ;;  %v1228_v38 = vadd.f32 %v1227_v60, %v1179_v43 }
 0x195   :  { %v1476_v5 = vrot.slane %v1475_v16, 4  ;;  %v1363_v59 = vadd.f32 %v3623_v50, %v1319_v48 }
 0x196   :  { %v3657_v15 = vpop.f32.mrf.mxu3 }
 0x197   :  { %v1477_v9 = vmax.f32 %v1475_v16, %v1476_v5  ;;  %v1395_v1 = vmax.f32 %v1363_v59, 0.0 }
 0x198   :  { %v1271_v47 = vpop.f32.mrf.mxu0  ;;  %v3654_v46 = vpop.f32.mrf.mxu2 }
 0x199   :  { %v1478_v35 = vrot.slane %v1477_v9, 2  ;;  %v1272_v18 = vadd.f32 %v1271_v47, %v1223_v51  ;;  %v1320_v52 = vpop.f32.mrf.mxu1  ;;  %v1431_v25 = vmul.f32 %v3631_v39, %v1395_v1 }
 0x19b   :  { %v1479_v0 = vmax.f32 %v1477_v9, %v1478_v35  ;;  %v1321_v26 = vadd.f32 %v1320_v52, %v1272_v18  ;;  %v2445_v52 = vld [vmem:[%s3757_s4 + $0x60] sm:$0xff] }
 0x19c   :  { %1787 = vmatpush.bf16.msrb.mxu3 %v2445_v52 }
 0x19d   :  { %v1480_v30 = vrot.slane %v1479_v0, 1  ;;  %v1365_v54 = vadd.f32 %v3623_v50, %v1321_v26 }
 0x19e   :  { %v1232_v57 = vpop.f32.mrf.mxu3 }
 0x19f   :  { %v1481_v44 = vmax.f32 %v1479_v0, %v1480_v30  ;;  %v1397_v6 = vmax.f32 %v1365_v54, 0.0 }
 0x1a0   :  { %v1274_v22 = vpop.f32.mrf.mxu0  ;;  %v1183_v58 = vpop.f32.mrf.mxu2 }
 0x1a1   :  { %v1569_v27 = vpack.c.bf16 %v1481_v44, %v1481_v44  ;;  %v1433_v51 = vmul.f32 %v3636_v63, %v1397_v6  ;;  %v1275_v19 = vadd.f32 %v1274_v22, %v1226_v12  ;;  %v1323_v24 = vpop.f32.mrf.mxu1  ;;  %v1184_v43 = vadd.f32 %v1183_v58, %v3537_v40 }
 0x1a3   :  { %v1637_v20 = vunpack.c.l.b16 %v1569_v27  ;;  %v1489_v2 = vmax.f32 %v1431_v25, %v1433_v51  ;;  %v1324_v33 = vadd.f32 %v1323_v24, %v1275_v19  ;;  %v2444_v24 = vld [vmem:[%s3757_s4 + $0x58] sm:$0xff] }
 0x1a4   :  { %1788 = vmatpush.bf16.msrb.mxu3 %v2444_v24 }
 0x1a5   :  { %v1664_v4 = vsel %vm1650_vm4, %v1637_v20, %v1635_v55  ;;  %v1490_v37 = vrot.slane %v1489_v2, 4  ;;  %v1367_v17 = vadd.f32 %v3623_v50, %v1324_v33 }
 0x1a6   :  { %v1235_v9 = vpop.f32.mrf.mxu3 }
 0x1a7   :  { %v1491_v8 = vmax.f32 %v1489_v2, %v1490_v37  ;;  %v1399_v10 = vmax.f32 %v1367_v17, 0.0  ;;  %v1182_v2 = vadd.f32 %v3654_v46, %v3526_v53  ;;  %v1233_v37 = vadd.f32 %v1232_v57, %v1184_v43 }
 0x1a8   :  { %v1276_v12 = vpop.f32.mrf.mxu0  ;;  %v1186_v62 = vpop.f32.mrf.mxu2 }
 0x1a9   :  { %v1492_v13 = vrot.slane %v1491_v8, 2  ;;  %v1277_v23 = vadd.f32 %v1276_v12, %v1228_v38  ;;  %v1325_v34 = vpop.f32.mrf.mxu1  ;;  %v1435_v5 = vmul.f32 %v3631_v39, %v1399_v10  ;;  %v1231_v12 = vadd.f32 %v3657_v15, %v1182_v2 }
 0x1ab   :  { %v1493_v56 = vmax.f32 %v1491_v8, %v1492_v13  ;;  %v1326_v11 = vadd.f32 %v1325_v34, %v1277_v23 }
 0x1ad   :  { %v1494_v61 = vrot.slane %v1493_v56, 1  ;;  %v1369_v21 = vadd.f32 %v3623_v50, %v1326_v11 }
 0x1ae   :  { %v1237_v32 = vpop.f32.mrf.mxu3 }
 0x1af   :  { %v1495_v42 = vmax.f32 %v1493_v56, %v1494_v61  ;;  %v1401_v16 = vmax.f32 %v1369_v21, 0.0 }
 0x1b0   :  { %v1279_v48 = vpop.f32.mrf.mxu0  ;;  %v1188_v0 = vpop.f32.mrf.mxu2 }
 0x1b1   :  { %v1571_v60 = vpack.c.bf16 %v1495_v42, %v1495_v42  ;;  %v1437_v28 = vmul.f32 %v3636_v63, %v1401_v16  ;;  %v1328_v7 = vpop.f32.mrf.mxu1  ;;  %v1189_v20 = vadd.f32 %v1188_v0, %v3559_v29  ;;  %v1280_v23 = vadd.f32 %v1279_v48, %v1231_v12 }
 0x1b3   :  { %v1639_v47 = vunpack.c.l.b16 %v1571_v60  ;;  %v1503_v35 = vmax.f32 %v1435_v5, %v1437_v28  ;;  %v1238_v38 = vadd.f32 %v1237_v32, %v1189_v20  ;;  %v1329_v46 = vadd.f32 %v1328_v7, %v1280_v23 }
 0x1b5   :  { %v1665_v59 = vsel %vm1652_vm5, %v1639_v47, %v1664_v4  ;;  %v1504_v18 = vrot.slane %v1503_v35, 4  ;;  %v1187_v4 = vadd.f32 %v1186_v62, %v3545_v49  ;;  %v1371_v16 = vadd.f32 %v3623_v50, %v1329_v46 }
 0x1b6   :  { %v1240_v33 = vpop.f32.mrf.mxu3 }
 0x1b7   :  { %v1505_v3 = vmax.f32 %v1503_v35, %v1504_v18  ;;  %v1236_v40 = vadd.f32 %v1235_v9, %v1187_v4  ;;  %v1403_v47 = vmax.f32 %v1371_v16, 0.0 }
 0x1b8   :  { %v1281_v26 = vpop.f32.mrf.mxu0  ;;  %v1191_v51 = vpop.f32.mrf.mxu2 }
 0x1b9   :  { %v1506_v30 = vrot.slane %v1505_v3, 2  ;;  %v1330_v1 = vpop.f32.mrf.mxu1  ;;  %v1282_v13 = vadd.f32 %v1281_v26, %v1233_v37  ;;  %v1192_v58 = vadd.f32 %v1191_v51, %v3574_v14  ;;  %v2443_v14 = vld [vmem:[%s3757_s4 + $0x50] sm:$0xff] }
 0x1ba   :  { %1789 = vmatpush.bf16.msrb.mxu3 %v2443_v14 }
 0x1bb   :  { %v1507_v54 = vmax.f32 %v1505_v3, %v1506_v30  ;;  %v1331_v56 = vadd.f32 %v1330_v1, %v1282_v13  ;;  %v1241_v11 = vadd.f32 %v1240_v33, %v1192_v58 }
 0x1bd   :  { %v1508_v44 = vrot.slane %v1507_v54, 1  ;;  %v1373_v62 = vadd.f32 %v3623_v50, %v1331_v56 }
 0x1be   :  { %v1242_v61 = vpop.f32.mrf.mxu3 }
 0x1bf   :  { %v1509_v6 = vmax.f32 %v1507_v54, %v1508_v44  ;;  %v1405_v5 = vmax.f32 %v1373_v62, 0.0  ;;  %v1439_v54 = vmul.f32 %v3631_v39, %v1403_v47 }
 0x1c0   :  { %v1284_v22 = vpop.f32.mrf.mxu0  ;;  %v1193_v29 = vpop.f32.mrf.mxu2 }
 0x1c1   :  { %v1573_v27 = vpack.c.bf16 %v1509_v6, %v1509_v6  ;;  %v1333_v25 = vpop.f32.mrf.mxu1  ;;  %v1285_v34 = vadd.f32 %v1284_v22, %v1236_v40  ;;  %v1194_v15 = vadd.f32 %v1193_v29, %v3589_v41  ;;  %v1441_v3 = vmul.f32 %v3636_v63, %v1405_v5 }
 0x1c3   :  { %v1641_v19 = vunpack.c.l.b16 %v1573_v27  ;;  %v1334_v57 = vadd.f32 %v1333_v25, %v1285_v34  ;;  %v1243_v7 = vadd.f32 %v1242_v61, %v1194_v15  ;;  %v1517_v22 = vmax.f32 %v1439_v54, %v1441_v3 }
 0x1c5   :  { %v3679_v55 = vsel %vm1654_vm6, %v1641_v19, %v1665_v59  ;;  %v1375_v48 = vadd.f32 %v3623_v50, %v1334_v57  ;;  %v1518_v4 = vrot.slane %v1517_v22, 4 }
 0x1c6   :  { %v1245_v0 = vpop.f32.mrf.mxu3 }
 0x1c7   :  { %v1407_v59 = vmax.f32 %v1375_v48, 0.0  ;;  %v1519_v58 = vmax.f32 %v1517_v22, %v1518_v4  ;;  %v2456_v48 = vld [vmem:[%s3759_s6 + $0x38] sm:$0xff]  ;;  %v2474_v4 = vld [vmem:[%s3758_s5] ss:$0 sm:$0xff] }
 0x1c8   :  { %v1286_v36 = vpop.f32.mrf.mxu0  ;;  %v1196_v28 = vpop.f32.mrf.mxu2  ;;  %1867 = vmatpush.bf16.msra.mxu2 %v2456_v48 }
 0x1c9   :  { %v1335_v8 = vpop.f32.mrf.mxu1  ;;  %v1287_v17 = vadd.f32 %v1286_v36, %v1238_v38  ;;  %v1197_v26 = vadd.f32 %v1196_v28, %v3603_v31  ;;  %v1443_v32 = vmul.f32 %v3631_v39, %v1407_v59  ;;  %v2442_v31 = vld [vmem:[%s3757_s4 + $0x48] sm:$0xff] }
 0x1ca   :  { %1790 = vmatpush.bf16.msrb.mxu3 %v2442_v31 }
 0x1cb   :  { %v1336_v53 = vadd.f32 %v1335_v8, %v1287_v17  ;;  %v1246_v27 = vadd.f32 %v1245_v0, %v1197_v26  ;;  %v2441_v8 = vld [vmem:[%s3757_s4 + $0x40] sm:$0xff] }
 0x1cc   :  { %v2453_v0 = vld [vmem:[%s3759_s6 + $0x20] sm:$0xff] }
 0x1cd   :  { %v1377_v42 = vadd.f32 %v3623_v50, %v1336_v53  ;;  %v1520_v53 = vrot.slane %v1519_v58, 2 }
 0x1ce   :  { %v1247_v12 = vpop.f32.mrf.mxu3  ;;  %1791 = vmatpush.bf16.msrb.mxu3 %v2441_v8 }
 0x1cf   :  { %v1409_v9 = vmax.f32 %v1377_v42, 0.0 }
 0x1d0   :  { %v1289_v49 = vpop.f32.mrf.mxu0  ;;  %v1198_v19 = vpop.f32.mrf.mxu2 }
 0x1d1   :  { %v1290_v10 = vadd.f32 %v1289_v49, %v1241_v11  ;;  %v1338_v21 = vpop.f32.mrf.mxu1  ;;  %v1445_v30 = vmul.f32 %v3636_v63, %v1409_v9  ;;  %v1199_v36 = vadd.f32 %v1198_v19, %v3615_v45  ;;  %v2451_v19 = vld [vmem:[%s3759_s6 + $0x10] sm:$0xff] }
 0x1d3   :  { %v1339_v60 = vadd.f32 %v1338_v21, %v1290_v10  ;;  %v1531_v25 = vmax.f32 %v1443_v32, %v1445_v30  ;;  %v1248_v23 = vadd.f32 %v1247_v12, %v1199_v36  ;;  %v1521_v21 = vmax.f32 %v1519_v58, %v1520_v53 }
 0x1d5   :  { %v1379_v41 = vadd.f32 %v3623_v50, %v1339_v60  ;;  %v1532_v37 = vrot.slane %v1531_v25, 4  ;;  %v1522_v60 = vrot.slane %v1521_v21, 1 }
 0x1d7   :  { %v1411_v44 = vmax.f32 %v1379_v41, 0.0  ;;  %v1533_v17 = vmax.f32 %v1531_v25, %v1532_v37  ;;  %v1523_v47 = vmax.f32 %v1521_v21, %v1522_v60 }
 0x1d8   :  { %v1291_v35 = vpop.f32.mrf.mxu0 }
 0x1d9   :  { %v1292_v18 = vadd.f32 %v1291_v35, %v1243_v7  ;;  %v1340_v52 = vpop.f32.mrf.mxu1  ;;  %v1447_v43 = vmul.f32 %v3631_v39, %v1411_v44  ;;  %v1534_v45 = vrot.slane %v1533_v17, 2  ;;  %v2452_v44 = vld [vmem:[%s3759_s6 + $0x18] sm:$0xff] }
 0x1db   :  { %v1341_v1 = vadd.f32 %v1340_v52, %v1292_v18  ;;  %v1535_v62 = vmax.f32 %v1533_v17, %v1534_v45  ;;  %v1575_v18 = vpack.c.bf16 %v1523_v47, %v1523_v47 }
 0x1dd   :  { %v1381_v6 = vadd.f32 %v3623_v50, %v1341_v1  ;;  %v1536_v5 = vrot.slane %v1535_v62, 1  ;;  %v1643_v1 = vunpack.c.l.b16 %v1575_v18 }
 0x1df   :  { %v1413_v51 = vmax.f32 %v1381_v6, 0.0  ;;  %v1537_v35 = vmax.f32 %v1535_v62, %v1536_v5 }
 0x1e0   :  { %v1294_v24 = vpop.f32.mrf.mxu0 }
 0x1e1   :  { %v1449_v20 = vmul.f32 %v3636_v63, %v1413_v51  ;;  %v1295_v2 = vadd.f32 %v1294_v24, %v1246_v27  ;;  %v1343_v33 = vpop.f32.mrf.mxu1  ;;  %v1577_v52 = vpack.c.bf16 %v1537_v35, %v1537_v35  ;;  %v1667_v27 = vsel %vm1656_vm7, %v1643_v1, %v3679_v55  ;;  %v2450_v55 = vld [vmem:[%s3759_s6 + $0x8] sm:$0xff] }
 0x1e3   :  { %v1545_v38 = vmax.f32 %v1447_v43, %v1449_v20  ;;  %v1344_v40 = vadd.f32 %v1343_v33, %v1295_v2  ;;  %v1645_v54 = vunpack.c.l.b16 %v1577_v52  ;;  %v2449_v33 = vld [vmem:[%s3759_s6] sm:$0xff] }
 0x1e5   :  { %v1546_v13 = vrot.slane %v1545_v38, 4  ;;  %v1383_v56 = vadd.f32 %v3623_v50, %v1344_v40  ;;  %v1668_v51 = vsel %vm1658_vm8, %v1645_v54, %v1667_v27  ;;  %v2475_v40 = vld [vmem:[%s3760_s7] ss:$0 sm:$0xff] }
 0x1e7   :  { %v1547_v29 = vmax.f32 %v1545_v38, %v1546_v13  ;;  %v1415_v57 = vmax.f32 %v1383_v56, 0.0 }
 0x1e8   :  { %v1296_v34 = vpop.f32.mrf.mxu0 }
 0x1e9   :  { %v1297_v11 = vadd.f32 %v1296_v34, %v1248_v23  ;;  %v1345_v46 = vpop.f32.mrf.mxu1  ;;  %v1548_v49 = vrot.slane %v1547_v29, 2  ;;  %v1451_v14 = vmul.f32 %v3631_v39, %v1415_v57  ;;  %v2454_v39 = vld [vmem:[%s3759_s6 + $0x28] sm:$0xff] }
 0x1eb   :  { %v1346_v61 = vadd.f32 %v1345_v46, %v1297_v11  ;;  %v1549_v42 = vmax.f32 %v1547_v29, %v1548_v49 }
 0x1ed   :  { %v1385_v10 = vadd.f32 %v3623_v50, %v1346_v61  ;;  %v2455_v50 = vld [vmem:[%s3759_s6 + $0x30] sm:$0xff]  ;;  %v1550_v7 = vrot.slane %v1549_v42, 1 }
 0x1ee   :  { %1868 = vmatpush.bf16.msra.mxu2 %v2455_v50 }
 0x1ef   :  { %v1417_v15 = vmax.f32 %v1385_v10, 0.0 }
 0x1f1   :  { %v1453_v16 = vmul.f32 %v3636_v63, %v1417_v15  ;;  %v1551_v63 = vmax.f32 %v1549_v42, %v1550_v7 }
 0x1f2   :  { %1869 = vmatpush.bf16.msra.mxu2 %v2454_v39 }
 0x1f3   :  { %v1559_v28 = vmax.f32 %v1451_v14, %v1453_v16  ;;  %v1579_v26 = vpack.c.bf16 %v1551_v63, %v1551_v63 }
 0x1f5   :  { %v1560_v9 = vrot.slane %v1559_v28, 4  ;;  %v1647_v6 = vunpack.c.l.b16 %v1579_v26 }
 0x1f6   :  { %1870 = vmatpush.bf16.msra.mxu2 %v2453_v0 }
 0x1f7   :  { %v1561_v59 = vmax.f32 %v1559_v28, %v1560_v9  ;;  %v1669_v24 = vsel %vm1660_vm9, %v1647_v6, %v1668_v51 }
 0x1f9   :  { %v1562_v41 = vrot.slane %v1561_v59, 2 }
 0x1fa   :  { %1871 = vmatpush.bf16.msra.mxu2 %v2452_v44 }
 0x1fb   :  { %v1563_v3 = vmax.f32 %v1561_v59, %v1562_v41 }
 0x1fd   :  { %v1564_v30 = vrot.slane %v1563_v3, 1 }
 0x1fe   :  { %1872 = vmatpush.bf16.msra.mxu2 %v2451_v19 }
 0x1ff   :  { %v1565_v32 = vmax.f32 %v1563_v3, %v1564_v30 }
 0x201   :  { %v1581_v22 = vpack.c.bf16 %v1565_v32, %v1565_v32 }
 0x202   :  { %1873 = vmatpush.bf16.msra.mxu2 %v2450_v55 }
 0x203   :  { %v1649_v25 = vunpack.c.l.b16 %v1581_v22 }
 0x205   :  { %v1670_v31 = vsel %vm1662_vm10, %v1649_v25, %v1669_v24 }
 0x206   :  { %v1672_v43 = vpack.c.b16 %v1670_v31, %v1670_v31  ;;  %1874 = vmatpush.bf16.msra.mxu2 %v2449_v33 }
 0x208   :  { %1792 = vmatmul.bf16.vlgmr.msrb.gmra.mxu3 %v1672_v43 }
 0x209   :  { %v1780_v20 = vpop.f32.mrf.mxu2 }
 0x20a   :  { %v1781_v37 = vadd.f32 %v2474_v4, %v1780_v20 }
 0x211   :  { %v1782_v2 = vpop.f32.mrf.mxu2 }
 0x28b   :  { %v1793_v36 = vpop.f32.mrf.mxu3 }
 0x28c   :  { %v1794_v38 = vadd.f32 %v1793_v36, %v1781_v37 }
 0x28e   :  { %v1797_v8 = vmax.f32 %v1794_v38, 0.0 }
 0x290   :  { %v1798_v12 = vpack.c.bf16 %v1797_v8, %v1797_v8 }
 0x292   :  { %1875 = vmatmul.bf16.vlgmr.msra.gmra.mxu2 %v1798_v12 }
 0x293   :  { %v1795_v13 = vpop.f32.mrf.mxu3 }
 0x315   :  { %v1876_v58 = vpop.f32.mrf.mxu2 }
 0x316   :  { %v1877_v17 = vadd.f32 %v2475_v40, %v1876_v58 }
 0x318   :  { %1880 = vst [vmem:[#allocation2] sm:$0xff] %v1877_v17 }
 0x319   :  { %1891 = dma.vmem_to_hbm [thread:$0]  %s1887_s14, 128, %s1889_s16, [#allocation3]  }
 0x31d   :  { %v1878_v23 = vpop.f32.mrf.mxu2 }
 0x31e   :  { %2501 = dma.done.wait [#allocation3], 128  }
 0x31f   :  { %2502 = vsyncadd [#allocation3], 4294967168 }
 0x320   :  { %1896 = vsyncpa [#allocation3], 1 }

</bundles_post_ra>
